<compile_context>
chip_gen: v6e
topology: v6e:2x2x1
jax: 0.10.0
libtpu: 0.0.40
codegen_flags: <defaults>
</compile_context>

<pallas_src>
import functools

import jax
import jax.numpy as jnp
from jax import lax
from jax.experimental import pallas as pl
from jax.experimental.pallas import tpu as pltpu


def _fused_kernel(w_ref, x_ref, gamma_ref, beta_ref, o_ref, *, count, eps):
    # 1x1 conv in native layout: (cout_blk, Cin) @ (Cin, HW) -> (cout_blk, HW),
    # f32 MXU accumulation.  No in-kernel dtype cast: operands arrive in the dtype the
    # caller stores in HBM (bf16 in the DenseNet pipeline).
    y = jnp.dot(w_ref[...], x_ref[...], preferred_element_type=jnp.float32)

    # Training-mode batch statistics (biased variance), per channel == per row.
    # Two-pass variance avoids the E[y^2] - E[y]^2 cancellation; y is resident in VMEM
    # so the extra VPU pass is noise relative to the DMA time.
    inv_n = jnp.float32(1.0 / count)
    mean = jnp.sum(y, axis=1, keepdims=True) * inv_n            # (cout_blk, 1)
    d = y - mean
    var = jnp.sum(d * d, axis=1, keepdims=True) * inv_n         # (cout_blk, 1)

    scale = lax.rsqrt(var + jnp.float32(eps)) * gamma_ref[...]  # (cout_blk, 1)  EUP rsqrt
    o_ref[...] = jnp.maximum(d * scale + beta_ref[...], 0.0).astype(o_ref.dtype)


def _default_cout_blocks(cout):
    """Split Cout across both TensorCores on v7x; single block elsewhere."""
    try:
        kind = jax.devices()[0].device_kind.lower()
    except Exception:
        return 1
    if "v7" in kind and cout % 16 == 0:
        return 2
    return 1


def conv_bn_relu(x_nchw, weight, gamma, beta, *, eps=1e-5,
                 out_dtype=jnp.bfloat16, cout_blocks=None):
    """Fused Conv2d(1x1, bias=False) + BatchNorm2d(training stats) + ReLU.

    x_nchw: (1, Cin, H, W); weight: (Cout, Cin, 1, 1) or (Cout, Cin); gamma/beta: (Cout,).
    Pass bf16 x/weight for half the HBM traffic; f32 also works (just more DMA).
    """
    N, Cin, H, W = x_nchw.shape
    assert N == 1, "kernel is specialized to the module's batch size of 1"
    Cout = weight.shape[0]
    HW = H * W

    if cout_blocks is None:
        cout_blocks = _default_cout_blocks(Cout)
    assert Cout % (8 * cout_blocks) == 0
    cb = Cout // cout_blocks

    x2 = x_nchw.reshape(Cin, HW)        # free: NCHW with N=1 is (Cin, HW) row-major
    w2 = weight.reshape(Cout, Cin)      # free: PyTorch conv weight is (Cout, Cin, 1, 1)
    gamma2 = gamma.reshape(Cout, 1).astype(jnp.float32)
    beta2 = beta.reshape(Cout, 1).astype(jnp.float32)

    kernel = functools.partial(_fused_kernel, count=HW, eps=eps)

    bytes_accessed = (x2.size * x2.dtype.itemsize
                      + w2.size * w2.dtype.itemsize
                      + gamma2.size * 4 + beta2.size * 4
                      + Cout * HW * jnp.dtype(out_dtype).itemsize)
    cost = pl.CostEstimate(flops=2 * Cout * Cin * HW,
                           transcendentals=Cout,
                           bytes_accessed=bytes_accessed)

    # Problem is small (196 spatial positions, ~1.3 MB bf16 HBM traffic): a single resident
    # block per core beats K-chunking (per-step overhead would exceed the exposed compute).
    out = pl.pallas_call(
        kernel,
        out_shape=jax.ShapeDtypeStruct((Cout, HW), out_dtype),
        grid=(cout_blocks,),
        in_specs=[
            pl.BlockSpec((cb, Cin), lambda i: (i, 0)),     # weight: split over Cout
            pl.BlockSpec((Cin, HW), lambda i: (0, 0)),     # activation: shared
            pl.BlockSpec((cb, 1), lambda i: (i, 0)),       # gamma
            pl.BlockSpec((cb, 1), lambda i: (i, 0)),       # beta
        ],
        out_specs=pl.BlockSpec((cb, HW), lambda i: (i, 0)),
        compiler_params=pltpu.CompilerParams(dimension_semantics=("parallel",)),
        cost_estimate=cost,
    )(w2, x2, gamma2, beta2)

    return out.reshape(N, Cout, H, W)   # free reshape back to NCHW


def _reference(x_nchw, weight, gamma, beta, *, eps=1e-5):
    """Pure-JAX f32 reference matching PyTorch Conv2d(1x1)+BatchNorm2d(train)+ReLU."""
    N, Cin, H, W = x_nchw.shape
    Cout = weight.shape[0]
    w2 = weight.reshape(Cout, Cin).astype(jnp.float32)
    x2 = x_nchw.reshape(Cin, H * W).astype(jnp.float32)
    y = w2 @ x2                                            # (Cout, HW)
    mean = jnp.mean(y, axis=1, keepdims=True)
    var = jnp.mean((y - mean) ** 2, axis=1, keepdims=True)
    out = ((y - mean) * lax.rsqrt(var + eps) * gamma.reshape(Cout, 1).astype(jnp.float32)
           + beta.reshape(Cout, 1).astype(jnp.float32))
    return jnp.maximum(out, 0.0).reshape(N, Cout, H, W)


if __name__ == "__main__":
    key = jax.random.PRNGKey(0)
    k_x, k_w, k_g, k_b = jax.random.split(key, 4)

    N, Cin, H, W, Cout = 1, 1728, 14, 14, 128

    x_f32 = jax.random.normal(k_x, (N, Cin, H, W), dtype=jnp.float32)
    w_f32 = jax.random.normal(k_w, (Cout, Cin, 1, 1), dtype=jnp.float32) * 0.02
    gamma = 1.0 + 0.1 * jax.random.normal(k_g, (Cout,), dtype=jnp.float32)
    beta = 0.1 * jax.random.normal(k_b, (Cout,), dtype=jnp.float32)

    # bf16 operands are produced once OUTSIDE the kernel (weight at parameter setup,
    # activation from the upstream bf16 layer), so the kernel reads bf16 straight from HBM.
    x = x_f32.astype(jnp.bfloat16)
    w = w_f32.astype(jnp.bfloat16)

    fwd = jax.jit(conv_bn_relu)
    out = jax.block_until_ready(fwd(x, w, gamma, beta))
    assert out.shape == (N, Cout, H, W)
    out_f32 = out.astype(jnp.float32)

    # (a) Kernel-math check: identical bf16-quantized operands, pure-JAX f32 reference
    #     (tolerance covers only the bf16 output rounding + accumulation-order noise).
    ref_q = _reference(x, w, gamma, beta)
    assert jnp.allclose(out_f32, ref_q, atol=1.5e-2, rtol=1.5e-2), "kernel math mismatch"

    # (b) Full-precision module semantics: bf16 matmul operands + f32 accumulation;
    #     BN renormalization keeps the deviation at the few-1e-2 level.
    ref_f32 = _reference(x_f32, w_f32, gamma, beta)
    assert jnp.allclose(out_f32, ref_f32, atol=3e-2, rtol=3e-2), "mismatch vs f32 reference"

    print("KERNEL_OK")
</pallas_src>

<mosaic_0001>
module attributes {stable_mosaic.version = 11 : i64} {
  func.func @_fused_kernel(%arg0: i32, %arg1: memref<128x1728xbf16, #tpu.memory_space<vmem>>, %arg2: memref<1728x196xbf16, #tpu.memory_space<vmem>>, %arg3: memref<128x1xf32, #tpu.memory_space<vmem>>, %arg4: memref<128x1xf32, #tpu.memory_space<vmem>>, %arg5: memref<128x196xbf16, #tpu.memory_space<vmem>>) attributes {dimension_semantics = [#tpu.dimension_semantics<parallel>], iteration_bounds = array<i64: 1>, scalar_prefetch = 0 : i64, scratch_operands = 0 : i64, tpu.core_type = #tpu.core_type<tc>, window_params = [{transform_indices = @transform_0, window_bounds = array<i64: 128, 1728>}, {pipeline_mode = #tpu.pipeline_mode<synchronous>, transform_indices = @transform_1, window_bounds = array<i64: 1728, 196>}, {transform_indices = @transform_2, window_bounds = array<i64: 128, 1>}, {transform_indices = @transform_3, window_bounds = array<i64: 128, 1>}, {transform_indices = @transform_4, window_bounds = array<i64: 128, 196>}]} {
    %c0 = arith.constant 0 : index
    %c0_0 = arith.constant 0 : index
    %0 = vector.load %arg1[%c0, %c0_0] : memref<128x1728xbf16, #tpu.memory_space<vmem>>, vector<128x1728xbf16>
    %c0_1 = arith.constant 0 : index
    %c0_2 = arith.constant 0 : index
    %1 = vector.load %arg2[%c0_1, %c0_2] : memref<1728x196xbf16, #tpu.memory_space<vmem>>, vector<1728x196xbf16>
    %cst = arith.constant dense<0.000000e+00> : vector<128x196xf32>
    %2 = tpu.matmul %0, %1, %cst {dimension_numbers = #tpu.dot_dimension_numbers<[1], [0], [0], [1], [0, 0, 1, 1], [], []>} : vector<128x1728xbf16>, vector<1728x196xbf16>, vector<128x196xf32> -> vector<128x196xf32>
    %cst_3 = arith.constant dense<0.000000e+00> : vector<128xf32>
    %3 = vector.multi_reduction <add>, %2, %cst_3 [1] : vector<128x196xf32> to vector<128xf32>
    %4 = vector.shape_cast %3 : vector<128xf32> to vector<128x1xf32>
    %cst_4 = arith.constant 0.00510204071 : f32
    %5 = vector.broadcast %cst_4 : f32 to vector<128x1xf32>
    %6 = arith.mulf %4, %5 : vector<128x1xf32>
    %7 = vector.broadcast %6 : vector<128x1xf32> to vector<128x196xf32>
    %8 = arith.subf %2, %7 : vector<128x196xf32>
    %9 = arith.mulf %8, %8 : vector<128x196xf32>
    %cst_5 = arith.constant dense<0.000000e+00> : vector<128xf32>
    %10 = vector.multi_reduction <add>, %9, %cst_5 [1] : vector<128x196xf32> to vector<128xf32>
    %11 = vector.shape_cast %10 : vector<128xf32> to vector<128x1xf32>
    %cst_6 = arith.constant 0.00510204071 : f32
    %12 = vector.broadcast %cst_6 : f32 to vector<128x1xf32>
    %13 = arith.mulf %11, %12 : vector<128x1xf32>
    %cst_7 = arith.constant 9.99999974E-6 : f32
    %14 = vector.broadcast %cst_7 : f32 to vector<128x1xf32>
    %15 = arith.addf %13, %14 : vector<128x1xf32>
    %16 = math.rsqrt %15 : vector<128x1xf32>
    %c0_8 = arith.constant 0 : index
    %c0_9 = arith.constant 0 : index
    %17 = vector.load %arg3[%c0_8, %c0_9] : memref<128x1xf32, #tpu.memory_space<vmem>>, vector<128x1xf32>
    %18 = arith.mulf %16, %17 : vector<128x1xf32>
    %19 = vector.broadcast %18 : vector<128x1xf32> to vector<128x196xf32>
    %20 = arith.mulf %8, %19 : vector<128x196xf32>
    %c0_10 = arith.constant 0 : index
    %c0_11 = arith.constant 0 : index
    %21 = vector.load %arg4[%c0_10, %c0_11] : memref<128x1xf32, #tpu.memory_space<vmem>>, vector<128x1xf32>
    %22 = vector.broadcast %21 : vector<128x1xf32> to vector<128x196xf32>
    %23 = arith.addf %20, %22 : vector<128x196xf32>
    %cst_12 = arith.constant 0.000000e+00 : f32
    %24 = vector.broadcast %cst_12 : f32 to vector<128x196xf32>
    %25 = arith.maximumf %23, %24 : vector<128x196xf32>
    %26 = arith.truncf %25 : vector<128x196xf32> to vector<128x196xbf16>
    %c0_13 = arith.constant 0 : index
    %c0_14 = arith.constant 0 : index
    %27 = vector.load %arg5[%c0_13, %c0_14] : memref<128x196xbf16, #tpu.memory_space<vmem>>, vector<128x196xbf16>
    tpu.vector_store %arg5[%c0_13, %c0_14], %26 {strides = array<i32>} : memref<128x196xbf16, #tpu.memory_space<vmem>>, vector<128x196xbf16>,
    return
  }
  func.func @transform_0(%arg0: i32) -> (i32, i32) {
    %c0_i32 = arith.constant 0 : i32
    %c0_i32_0 = arith.constant 0 : i32
    return %arg0, %c0_i32 : i32, i32
  }
  func.func @transform_1(%arg0: i32) -> (i32, i32) {
    %c0_i32 = arith.constant 0 : i32
    %c0_i32_0 = arith.constant 0 : i32
    %c0_i32_1 = arith.constant 0 : i32
    return %c0_i32, %c0_i32_0 : i32, i32
  }
  func.func @transform_2(%arg0: i32) -> (i32, i32) {
    %c0_i32 = arith.constant 0 : i32
    %c0_i32_0 = arith.constant 0 : i32
    return %arg0, %c0_i32 : i32, i32
  }
  func.func @transform_3(%arg0: i32) -> (i32, i32) {
    %c0_i32 = arith.constant 0 : i32
    %c0_i32_0 = arith.constant 0 : i32
    return %arg0, %c0_i32 : i32, i32
  }
  func.func @transform_4(%arg0: i32) -> (i32, i32) {
    %c0_i32 = arith.constant 0 : i32
    %c0_i32_0 = arith.constant 0 : i32
    return %arg0, %c0_i32 : i32, i32
  }
}

</mosaic_0001>

<bundles_post_ra>
// kernel: conv_bn_relu.1
= control target key start
LH: loop header
LB: loop body
LE: loop exit
PB: predicated region body
PF: predicated region fallthrough
CT: control target
= control target key end

     0   :  { %vm1978_vm0 = vcmask 523264   ;;  %vm2794_vm1 = vcmask 556032   ;;  %vm3451_vm2 = vcmask 1043456   ;;  %vm3452_vm3 = vcmask 556036   ;;  %s6271_s1 = inlined_call_operand.vmem [shape: bf16[1728,196], index: 1, kind: input, shape index: {}]   ;;  %s6272_s0 = inlined_call_operand.vmem [shape: bf16[128,1728], index: 0, kind: input, shape index: {}]   ;;  %s6273_s3 = inlined_call_operand.vmem [shape: f32[128,1], index: 3, kind: input, shape index: {}]   ;;  %s6274_s2 = inlined_call_operand.vmem [shape: f32[128,1], index: 2, kind: input, shape index: {}]   ;;  %s6275_s4 = inlined_call_operand.vmem [shape: bf16[128,196], index: 4, kind: output, shape index: {}]  }
   0x1   :  { %v3869_v0 = vld [vmem:[%s6271_s1 + $0x74] ss:$8 sps:$4 sm:$0xff]   ;;  %v3873_v2 = vld [vmem:[%s6271_s1 + $0x70] ss:$8 sps:$4 sm:$0xff]   ;;  %v3875_v4 = vld [vmem:[%s6271_s1 + $0x64] ss:$8 sps:$4 sm:$0xff]  }
   0x2   :  { %v3871_v1 = vld [vmem:[%s6271_s1 + $0x174] ss:$8 sps:$4 sm:$0xff]   ;;  %2003 = vmatprep.subr.bf16.mxu0 %v3869_v0  ;;  %v3874_v3 = vld [vmem:[%s6271_s1 + $0x170] ss:$8 sps:$4 sm:$0xff]   ;;  %v3877_v5 = vld [vmem:[%s6271_s1 + $0x164] ss:$8 sps:$4 sm:$0xff]  }
   0x3   :  { %2116 = vmatprep.subr.bf16.mxu1 %v3871_v1  ;;  %2004 = vmatpush1.bf16.msra.mxu0 %v3873_v2  ;;  %v3879_v6 = vld [vmem:[%s6271_s1 + $0x60] ss:$8 sps:$4 sm:$0xff]   ;;  %v3881_v8 = vld [vmem:[%s6271_s1 + $0x54] ss:$8 sps:$4 sm:$0xff]   ;;  %v3885_v10 = vld [vmem:[%s6271_s1 + $0x50] ss:$8 sps:$4 sm:$0xff]  }
   0x4   :  { %2117 = vmatpush1.bf16.msra.mxu1 %v3874_v3  ;;  %2005 = vmatprep.subr.bf16.mxu0 %v3875_v4  ;;  %v3880_v7 = vld [vmem:[%s6271_s1 + $0x160] ss:$8 sps:$4 sm:$0xff]   ;;  %v3883_v9 = vld [vmem:[%s6271_s1 + $0x154] ss:$8 sps:$4 sm:$0xff]   ;;  %v3886_v11 = vld [vmem:[%s6271_s1 + $0x150] ss:$8 sps:$4 sm:$0xff]  }
   0x5   :  { %2118 = vmatprep.subr.bf16.mxu1 %v3877_v5  ;;  %v3887_v12 = vld [vmem:[%s6271_s1 + $0x44] ss:$8 sps:$4 sm:$0xff]   ;;  %v3891_v14 = vld [vmem:[%s6271_s1 + $0x40] ss:$8 sps:$4 sm:$0xff]   ;;  %v3893_v16 = vld [vmem:[%s6271_s1 + $0x34] ss:$8 sps:$4 sm:$0xff]  }
   0x6   :  { %v3889_v13 = vld [vmem:[%s6271_s1 + $0x144] ss:$8 sps:$4 sm:$0xff]   ;;  %v3892_v15 = vld [vmem:[%s6271_s1 + $0x140] ss:$8 sps:$4 sm:$0xff]   ;;  %v3895_v17 = vld [vmem:[%s6271_s1 + $0x134] ss:$8 sps:$4 sm:$0xff]  }
   0x7   :  { %2006 = vmatpush1.bf16.msra.mxu0 %v3879_v6  ;;  %v3897_v18 = vld [vmem:[%s6271_s1 + $0x30] ss:$8 sps:$4 sm:$0xff]   ;;  %v3899_v20 = vld [vmem:[%s6271_s1 + $0x24] ss:$8 sps:$4 sm:$0xff]   ;;  %v3903_v22 = vld [vmem:[%s6271_s1 + $0x20] ss:$8 sps:$4 sm:$0xff]  }
   0x8   :  { %2119 = vmatpush1.bf16.msra.mxu1 %v3880_v7  ;;  %2007 = vmatprep.subr.bf16.mxu0 %v3881_v8  ;;  %v3898_v19 = vld [vmem:[%s6271_s1 + $0x130] ss:$8 sps:$4 sm:$0xff]   ;;  %v3901_v21 = vld [vmem:[%s6271_s1 + $0x124] ss:$8 sps:$4 sm:$0xff]   ;;  %v3904_v23 = vld [vmem:[%s6271_s1 + $0x120] ss:$8 sps:$4 sm:$0xff]  }
   0x9   :  { %2120 = vmatprep.subr.bf16.mxu1 %v3883_v9  ;;  %v3905_v24 = vld [vmem:[%s6271_s1 + $0x14] ss:$8 sps:$4 sm:$0xff]   ;;  %v3909_v26 = vld [vmem:[%s6271_s1 + $0x10] ss:$8 sps:$4 sm:$0xff]   ;;  %v3911_v28 = vld [vmem:[%s6271_s1 + $0x4] ss:$8 sps:$4 sm:$0xff]  }
   0xa   :  { %v3907_v25 = vld [vmem:[%s6271_s1 + $0x114] ss:$8 sps:$4 sm:$0xff]   ;;  %v3910_v27 = vld [vmem:[%s6271_s1 + $0x110] ss:$8 sps:$4 sm:$0xff]   ;;  %v3913_v29 = vld [vmem:[%s6271_s1 + $0x104] ss:$8 sps:$4 sm:$0xff]  }
   0xb   :  { %2008 = vmatpush1.bf16.msra.mxu0 %v3885_v10  ;;  %v3915_v30 = vld [vmem:[%s6271_s1] ss:$8 sps:$4 sm:$0xff]   ;;  %v3917_v32 = vld [vmem:[%s6271_s1 + $0xf4] ss:$8 sps:$4 sm:$0xff]   ;;  %v3921_v34 = vld [vmem:[%s6271_s1 + $0xf0] ss:$8 sps:$4 sm:$0xff]  }
   0xc   :  { %2121 = vmatpush1.bf16.msra.mxu1 %v3886_v11  ;;  %2009 = vmatprep.subr.bf16.mxu0 %v3887_v12  ;;  %v3916_v31 = vld [vmem:[%s6271_s1 + $0x100] ss:$8 sps:$4 sm:$0xff]   ;;  %v3919_v33 = vld [vmem:[%s6271_s1 + $0x1f4] ss:$8 sps:$4 sm:$0xff]   ;;  %v3922_v35 = vld [vmem:[%s6271_s1 + $0x1f0] ss:$8 sps:$4 sm:$0xff]  }
   0xd   :  { %2122 = vmatprep.subr.bf16.mxu1 %v3889_v13  ;;  %v3923_v36 = vld [vmem:[%s6271_s1 + $0xe4] ss:$8 sps:$4 sm:$0xff]   ;;  %v3927_v38 = vld [vmem:[%s6271_s1 + $0xe0] ss:$8 sps:$4 sm:$0xff]   ;;  %v3929_v40 = vld [vmem:[%s6271_s1 + $0xd4] ss:$8 sps:$4 sm:$0xff]  }
   0xe   :  { %v3925_v37 = vld [vmem:[%s6271_s1 + $0x1e4] ss:$8 sps:$4 sm:$0xff]   ;;  %v3928_v39 = vld [vmem:[%s6271_s1 + $0x1e0] ss:$8 sps:$4 sm:$0xff]   ;;  %v3931_v41 = vld [vmem:[%s6271_s1 + $0x1d4] ss:$8 sps:$4 sm:$0xff]  }
   0xf   :  { %2010 = vmatpush1.bf16.msra.mxu0 %v3891_v14  ;;  %v3933_v42 = vld [vmem:[%s6271_s1 + $0xd0] ss:$8 sps:$4 sm:$0xff]   ;;  %v3935_v44 = vld [vmem:[%s6271_s1 + $0xc4] ss:$8 sps:$4 sm:$0xff]   ;;  %v3939_v46 = vld [vmem:[%s6271_s1 + $0xc0] ss:$8 sps:$4 sm:$0xff]  }
  0x10   :  { %2123 = vmatpush1.bf16.msra.mxu1 %v3892_v15  ;;  %2011 = vmatprep.subr.bf16.mxu0 %v3893_v16  ;;  %v3934_v43 = vld [vmem:[%s6271_s1 + $0x1d0] ss:$8 sps:$4 sm:$0xff]   ;;  %v3937_v45 = vld [vmem:[%s6271_s1 + $0x1c4] ss:$8 sps:$4 sm:$0xff]   ;;  %v3940_v47 = vld [vmem:[%s6271_s1 + $0x1c0] ss:$8 sps:$4 sm:$0xff]  }
  0x11   :  { %2124 = vmatprep.subr.bf16.mxu1 %v3895_v17  ;;  %v3941_v48 = vld [vmem:[%s6271_s1 + $0xb4] ss:$8 sps:$4 sm:$0xff]   ;;  %v3970_v51 = vld [vmem:[%s6272_s0 + $0xc] ss:$56 sps:$4 sm:$0xff]   ;;  %v3945_v52 = vld [vmem:[%s6271_s1 + $0xb0] ss:$8 sps:$4 sm:$0xff]  }
  0x12   :  { %v3967_v49 = vld [vmem:[%s6272_s0 + $0x4] ss:$56 sps:$4 sm:$0xff]   ;;  %v3946_v53 = vld [vmem:[%s6271_s1 + $0x1b0] ss:$8 sps:$4 sm:$0xff]   ;;  %2148 = vmatprep.mubr.bf16.mxu1 %v3970_v51  ;;  %v3951_v56 = vld [vmem:[%s6271_s1 + $0xa0] ss:$8 sps:$4 sm:$0xff]  }
  0x13   :  { %2012 = vmatpush1.bf16.msra.mxu0 %v3897_v18  ;;  %v3943_v50 = vld [vmem:[%s6271_s1 + $0x1b4] ss:$8 sps:$4 sm:$0xff]   ;;  %2035 = vmatprep.mubr.bf16.mxu0 %v3967_v49  ;;  %v3947_v54 = vld [vmem:[%s6271_s1 + $0xa4] ss:$8 sps:$4 sm:$0xff]   ;;  %v3952_v57 = vld [vmem:[%s6271_s1 + $0x1a0] ss:$8 sps:$4 sm:$0xff]  }
  0x14   :  { %2125 = vmatpush1.bf16.msra.mxu1 %v3898_v19  ;;  %2013 = vmatprep.subr.bf16.mxu0 %v3899_v20  ;;  %v3949_v55 = vld [vmem:[%s6271_s1 + $0x1a4] ss:$8 sps:$4 sm:$0xff]   ;;  %v3953_v58 = vld [vmem:[%s6271_s1 + $0x94] ss:$8 sps:$4 sm:$0xff]   ;;  %v3957_v60 = vld [vmem:[%s6271_s1 + $0x90] ss:$8 sps:$4 sm:$0xff]  }
  0x15   :  { %2126 = vmatprep.subr.bf16.mxu1 %v3901_v21  ;;  %v3955_v59 = vld [vmem:[%s6271_s1 + $0x194] ss:$8 sps:$4 sm:$0xff]   ;;  %v3958_v61 = vld [vmem:[%s6271_s1 + $0x190] ss:$8 sps:$4 sm:$0xff]   ;;  %v3959_v62 = vld [vmem:[%s6271_s1 + $0x84] ss:$8 sps:$4 sm:$0xff]  }
  0x16   :  { %v3961_v63 = vld [vmem:[%s6271_s1 + $0x184] ss:$8 sps:$4 sm:$0xff]   ;;  %v3963_v0 = vld [vmem:[%s6271_s1 + $0x80] ss:$8 sps:$4 sm:$0xff]   ;;  %v3973_v2 = vld [vmem:[%s6271_s1 + $0x274] ss:$8 sps:$4 sm:$0xff]  }
  0x17   :  { %2014 = vmatpush1.bf16.msra.mxu0 %v3903_v22  ;;  %v3964_v1 = vld [vmem:[%s6271_s1 + $0x180] ss:$8 sps:$4 sm:$0xff]   ;;  %v3976_v3 = vld [vmem:[%s6271_s1 + $0x374] ss:$8 sps:$4 sm:$0xff]   ;;  %v3971_v6 = vld [vmem:[%s6271_s1 + $0x270] ss:$8 sps:$4 sm:$0xff]  }
  0x18   :  { %2127 = vmatpush1.bf16.msra.mxu1 %v3904_v23  ;;  %2015 = vmatprep.subr.bf16.mxu0 %v3905_v24  ;;  %v3965_v4 = vld [vmem:[%s6272_s0] ss:$56 sps:$4 sm:$0xff]   ;;  %v3979_v8 = vld [vmem:[%s6271_s1 + $0x264] ss:$8 sps:$4 sm:$0xff]   ;;  %v3985_v11 = vld [vmem:[%s6272_s0 + $0x7c] ss:$56 sps:$4 sm:$0xff]  }
  0x19   :  { %2128 = vmatprep.subr.bf16.mxu1 %v3907_v25  ;;  %v3968_v5 = vld [vmem:[%s6272_s0 + $0x8] ss:$56 sps:$4 sm:$0xff]   ;;  %v3974_v7 = vld [vmem:[%s6271_s1 + $0x370] ss:$8 sps:$4 sm:$0xff]   ;;  %v3982_v9 = vld [vmem:[%s6271_s1 + $0x364] ss:$8 sps:$4 sm:$0xff]  }
  0x1a   :  { %v3983_v10 = vld [vmem:[%s6272_s0 + $0x74] ss:$56 sps:$4 sm:$0xff]   ;;  %v3977_v12 = vld [vmem:[%s6271_s1 + $0x260] ss:$8 sps:$4 sm:$0xff]   ;;  %v3988_v17 = vld [vmem:[%s6272_s0 + $0x78] ss:$56 sps:$4 sm:$0xff]  }
  0x1b   :  { %2016 = vmatpush1.bf16.msra.mxu0 %v3909_v26  ;;  %v3980_v13 = vld [vmem:[%s6271_s1 + $0x360] ss:$8 sps:$4 sm:$0xff]   ;;  %v3991_v14 = vld [vmem:[%s6271_s1 + $0x254] ss:$8 sps:$4 sm:$0xff]   ;;  %v3989_v18 = vld [vmem:[%s6271_s1 + $0x250] ss:$8 sps:$4 sm:$0xff]  }
  0x1c   :  { %2129 = vmatpush1.bf16.msra.mxu1 %v3910_v27  ;;  %2017 = vmatprep.subr.bf16.mxu0 %v3911_v28  ;;  %v3994_v15 = vld [vmem:[%s6271_s1 + $0x354] ss:$8 sps:$4 sm:$0xff]   ;;  %v3987_v16 = vld [vmem:[%s6272_s0 + $0x70] ss:$56 sps:$4 sm:$0xff]   ;;  %v3997_v20 = vld [vmem:[%s6271_s1 + $0x244] ss:$8 sps:$4 sm:$0xff]  }
  0x1d   :  { %2130 = vmatprep.subr.bf16.mxu1 %v3913_v29  ;;  %v3992_v19 = vld [vmem:[%s6271_s1 + $0x350] ss:$8 sps:$4 sm:$0xff]   ;;  %v4000_v21 = vld [vmem:[%s6271_s1 + $0x344] ss:$8 sps:$4 sm:$0xff]   ;;  %v3995_v24 = vld [vmem:[%s6271_s1 + $0x240] ss:$8 sps:$4 sm:$0xff]  }
  0x1e   :  { %v4001_v22 = vld [vmem:[%s6272_s0 + $0xe4] ss:$56 sps:$4 sm:$0xff]   ;;  %v3998_v25 = vld [vmem:[%s6271_s1 + $0x340] ss:$8 sps:$4 sm:$0xff]   ;;  %vm6141_vm4 = vmor %vm3452_vm3, %vm3451_vm2 }
  0x1f   :  { %2018 = vmatpush1.bf16.msra.mxu0 %v3915_v30  ;;  %v4003_v23 = vld [vmem:[%s6272_s0 + $0xec] ss:$56 sps:$4 sm:$0xff]   ;;  %v4009_v26 = vld [vmem:[%s6271_s1 + $0x234] ss:$8 sps:$4 sm:$0xff]   ;;  %v4005_v28 = vld [vmem:[%s6272_s0 + $0xe0] ss:$56 sps:$4 sm:$0xff]  }
  0x20   :  { %2131 = vmatpush1.bf16.msra.mxu1 %v3916_v31  ;;  %2019 = vmatprep.subr.bf16.mxu0 %v3917_v32  ;;  %v4012_v27 = vld [vmem:[%s6271_s1 + $0x334] ss:$8 sps:$4 sm:$0xff]   ;;  %v4006_v29 = vld [vmem:[%s6272_s0 + $0xe8] ss:$56 sps:$4 sm:$0xff]   ;;  %v4007_v30 = vld [vmem:[%s6271_s1 + $0x230] ss:$8 sps:$4 sm:$0xff]  }
  0x21   :  { %2132 = vmatprep.subr.bf16.mxu1 %v3919_v33  ;;  %v4010_v31 = vld [vmem:[%s6271_s1 + $0x330] ss:$8 sps:$4 sm:$0xff]   ;;  %v4015_v32 = vld [vmem:[%s6271_s1 + $0x224] ss:$8 sps:$4 sm:$0xff]   ;;  %v4034_v49 = vld [vmem:[%s6271_s1 + $0x300] ss:$8 sps:$4 sm:$0xff]  }
  0x22   :  { %v4018_v33 = vld [vmem:[%s6271_s1 + $0x324] ss:$8 sps:$4 sm:$0xff]   ;;  %v4048_v51 = vld [vmem:[%s6271_s1 + $0x3f4] ss:$8 sps:$4 sm:$0xff]  }
  0x23   :  { %2020 = vmatpush2.bf16.msra.mxu0 %v3921_v34  ;;  %v4019_v34 = vld [vmem:[%s6272_s0 + $0x154] ss:$56 sps:$4 sm:$0xff]  }
  0x24   :  { %2133 = vmatpush2.bf16.msra.mxu1 %v3922_v35  ;;  %2021 = vmatprep.subr.bf16.mxu0 %v3923_v36  ;;  %v4021_v35 = vld [vmem:[%s6272_s0 + $0x15c] ss:$56 sps:$4 sm:$0xff]   ;;  %v4013_v36 = vld [vmem:[%s6271_s1 + $0x220] ss:$8 sps:$4 sm:$0xff]  }
  0x25   :  { %2134 = vmatprep.subr.bf16.mxu1 %v3925_v37  ;;  %v4016_v37 = vld [vmem:[%s6271_s1 + $0x320] ss:$8 sps:$4 sm:$0xff]  }
  0x27   :  { %2022 = vmatpush2.bf16.msra.mxu0 %v3927_v38  ;;  %v4027_v38 = vld [vmem:[%s6271_s1 + $0x214] ss:$8 sps:$4 sm:$0xff]  }
  0x28   :  { %2135 = vmatpush2.bf16.msra.mxu1 %v3928_v39  ;;  %2023 = vmatprep.subr.bf16.mxu0 %v3929_v40  ;;  %v4030_v39 = vld [vmem:[%s6271_s1 + $0x314] ss:$8 sps:$4 sm:$0xff]   ;;  %v4023_v40 = vld [vmem:[%s6272_s0 + $0x150] ss:$56 sps:$4 sm:$0xff]  }
  0x29   :  { %2136 = vmatprep.subr.bf16.mxu1 %v3931_v41  ;;  %v4024_v41 = vld [vmem:[%s6272_s0 + $0x158] ss:$56 sps:$4 sm:$0xff]  }
  0x2b   :  { %2024 = vmatpush2.bf16.msra.mxu0 %v3933_v42  ;;  %v4025_v42 = vld [vmem:[%s6271_s1 + $0x210] ss:$8 sps:$4 sm:$0xff]  }
  0x2c   :  { %2137 = vmatpush2.bf16.msra.mxu1 %v3934_v43  ;;  %2025 = vmatprep.subr.bf16.mxu0 %v3935_v44  ;;  %v4028_v43 = vld [vmem:[%s6271_s1 + $0x310] ss:$8 sps:$4 sm:$0xff]   ;;  %v4033_v44 = vld [vmem:[%s6271_s1 + $0x204] ss:$8 sps:$4 sm:$0xff]  }
  0x2d   :  { %2138 = vmatprep.subr.bf16.mxu1 %v3937_v45  ;;  %v4036_v45 = vld [vmem:[%s6271_s1 + $0x304] ss:$8 sps:$4 sm:$0xff]  }
  0x2f   :  { %2026 = vmatpush2.bf16.msra.mxu0 %v3939_v46  ;;  %v4037_v46 = vld [vmem:[%s6272_s0 + $0x1c4] ss:$56 sps:$4 sm:$0xff]  }
  0x30   :  { %2139 = vmatpush2.bf16.msra.mxu1 %v3940_v47  ;;  %2027 = vmatprep.subr.bf16.mxu0 %v3941_v48  ;;  %v4039_v47 = vld [vmem:[%s6272_s0 + $0x1cc] ss:$56 sps:$4 sm:$0xff]   ;;  %v4031_v48 = vld [vmem:[%s6271_s1 + $0x200] ss:$8 sps:$4 sm:$0xff]  }
  0x31   :  { %2140 = vmatprep.subr.bf16.mxu1 %v3943_v50  ;;  %v4045_v50 = vld [vmem:[%s6271_s1 + $0x2f4] ss:$8 sps:$4 sm:$0xff]  }
  0x33   :  { %2028 = vmatpush2.bf16.msra.mxu0 %v3945_v52  ;;  %v4041_v52 = vld [vmem:[%s6272_s0 + $0x1c0] ss:$56 sps:$4 sm:$0xff]  }
  0x34   :  { %2141 = vmatpush2.bf16.msra.mxu1 %v3946_v53  ;;  %2029 = vmatprep.subr.bf16.mxu0 %v3947_v54  ;;  %v4042_v53 = vld [vmem:[%s6272_s0 + $0x1c8] ss:$56 sps:$4 sm:$0xff]   ;;  %v4043_v54 = vld [vmem:[%s6271_s1 + $0x2f0] ss:$8 sps:$4 sm:$0xff]  }
  0x35   :  { %2142 = vmatprep.subr.bf16.mxu1 %v3949_v55  ;;  %v4046_v55 = vld [vmem:[%s6271_s1 + $0x3f0] ss:$8 sps:$4 sm:$0xff]  }
  0x37   :  { %2030 = vmatpush2.bf16.msra.mxu0 %v3951_v56  ;;  %v4051_v56 = vld [vmem:[%s6271_s1 + $0x2e4] ss:$8 sps:$4 sm:$0xff]  }
  0x38   :  { %2143 = vmatpush2.bf16.msra.mxu1 %v3952_v57  ;;  %2031 = vmatprep.subr.bf16.mxu0 %v3953_v58  ;;  %v4054_v57 = vld [vmem:[%s6271_s1 + $0x3e4] ss:$8 sps:$4 sm:$0xff]  }
  0x39   :  { %2144 = vmatprep.subr.bf16.mxu1 %v3955_v59  ;;  %v4055_v58 = vld [vmem:[%s6272_s0 + $0x234] ss:$56 sps:$4 sm:$0xff]  }
  0x3a   :  { %v4057_v59 = vld [vmem:[%s6272_s0 + $0x23c] ss:$56 sps:$4 sm:$0xff]  }
  0x3b   :  { %2032 = vmatpush2.bf16.msra.mxu0 %v3957_v60  ;;  %v4049_v60 = vld [vmem:[%s6271_s1 + $0x2e0] ss:$8 sps:$4 sm:$0xff]  }
  0x3c   :  { %2145 = vmatpush2.bf16.msra.mxu1 %v3958_v61  ;;  %2033 = vmatprep.subr.bf16.mxu0 %v3959_v62  ;;  %v4052_v61 = vld [vmem:[%s6271_s1 + $0x3e0] ss:$8 sps:$4 sm:$0xff]   ;;  %v4063_v62 = vld [vmem:[%s6271_s1 + $0x2d4] ss:$8 sps:$4 sm:$0xff]  }
  0x3d   :  { %2146 = vmatprep.subr.bf16.mxu1 %v3961_v63  ;;  %v4066_v63 = vld [vmem:[%s6271_s1 + $0x3d4] ss:$8 sps:$4 sm:$0xff]  }
  0x3f   :  { %2034 = vmatpush2.bf16.msra.mxu0 %v3963_v0  ;;  %v4059_v0 = vld [vmem:[%s6272_s0 + $0x230] ss:$56 sps:$4 sm:$0xff]  }
  0x40   :  { %2147 = vmatpush2.bf16.msra.mxu1 %v3964_v1  ;;  %2229 = vmatprep.subr.bf16.mxu0 %v3973_v2  ;;  %v4060_v1 = vld [vmem:[%s6272_s0 + $0x238] ss:$56 sps:$4 sm:$0xff]  }
  0x41   :  { %2342 = vmatprep.subr.bf16.mxu1 %v3976_v3  ;;  %v4061_v2 = vld [vmem:[%s6271_s1 + $0x2d0] ss:$8 sps:$4 sm:$0xff]  }
  0x42   :  { %2036 = vmatmul.mubr.bf16.vlgmr.msra.gmra.mxu0 %v3965_v4  ;;  %v4064_v3 = vld [vmem:[%s6271_s1 + $0x3d0] ss:$8 sps:$4 sm:$0xff]   ;;  %v4069_v4 = vld [vmem:[%s6271_s1 + $0x2c4] ss:$8 sps:$4 sm:$0xff]  }
  0x43   :  { %2149 = vmatmul.mubr.bf16.vlgmr.msra.gmra.mxu1 %v3968_v5  ;;  %2230 = vmatpush1.bf16.msra.mxu0 %v3971_v6  ;;  %v4072_v5 = vld [vmem:[%s6271_s1 + $0x3c4] ss:$8 sps:$4 sm:$0xff]  }
  0x44   :  { %2343 = vmatpush1.bf16.msra.mxu1 %v3974_v7  ;;  %2231 = vmatprep.subr.bf16.mxu0 %v3979_v8  ;;  %v4073_v6 = vld [vmem:[%s6272_s0 + $0x2a4] ss:$56 sps:$4 sm:$0xff]   ;;  %v4067_v8 = vld [vmem:[%s6271_s1 + $0x2c0] ss:$8 sps:$4 sm:$0xff]  }
  0x45   :  { %2344 = vmatprep.subr.bf16.mxu1 %v3982_v9  ;;  %2045 = vmatprep.mubr.bf16.mxu0 %v3983_v10  ;;  %v4075_v7 = vld [vmem:[%s6272_s0 + $0x2ac] ss:$56 sps:$4 sm:$0xff]   ;;  %v4070_v9 = vld [vmem:[%s6271_s1 + $0x3c0] ss:$8 sps:$4 sm:$0xff]   ;;  %v4081_v10 = vld [vmem:[%s6271_s1 + $0x2b4] ss:$8 sps:$4 sm:$0xff]  }
  0x46   :  { %2158 = vmatprep.mubr.bf16.mxu1 %v3985_v11  ;;  %v4084_v11 = vld [vmem:[%s6271_s1 + $0x3b4] ss:$8 sps:$4 sm:$0xff]  }
  0x47   :  { %2232 = vmatpush1.bf16.msra.mxu0 %v3977_v12  ;;  %v4077_v12 = vld [vmem:[%s6272_s0 + $0x2a0] ss:$56 sps:$4 sm:$0xff]  }
  0x48   :  { %2345 = vmatpush1.bf16.msra.mxu1 %v3980_v13  ;;  %2233 = vmatprep.subr.bf16.mxu0 %v3991_v14  ;;  %v4078_v13 = vld [vmem:[%s6272_s0 + $0x2a8] ss:$56 sps:$4 sm:$0xff]   ;;  %v4079_v14 = vld [vmem:[%s6271_s1 + $0x2b0] ss:$8 sps:$4 sm:$0xff]  }
  0x49   :  { %2346 = vmatprep.subr.bf16.mxu1 %v3994_v15  ;;  %v4082_v15 = vld [vmem:[%s6271_s1 + $0x3b0] ss:$8 sps:$4 sm:$0xff]  }
  0x4a   :  { %2046 = vmatmul.mubr.bf16.gmra.mxu0 %v3987_v16  ;;  %v4087_v16 = vld [vmem:[%s6271_s1 + $0x2a4] ss:$8 sps:$4 sm:$0xff]  }
  0x4b   :  { %2159 = vmatmul.mubr.bf16.gmra.mxu1 %v3988_v17  ;;  %2234 = vmatpush1.bf16.msra.mxu0 %v3989_v18  ;;  %v4090_v17 = vld [vmem:[%s6271_s1 + $0x3a4] ss:$8 sps:$4 sm:$0xff]  }
  0x4c   :  { %2347 = vmatpush1.bf16.msra.mxu1 %v3992_v19  ;;  %2235 = vmatprep.subr.bf16.mxu0 %v3997_v20  ;;  %v4091_v18 = vld [vmem:[%s6272_s0 + $0x314] ss:$56 sps:$4 sm:$0xff]   ;;  %v4085_v20 = vld [vmem:[%s6271_s1 + $0x2a0] ss:$8 sps:$4 sm:$0xff]  }
  0x4d   :  { %2348 = vmatprep.subr.bf16.mxu1 %v4000_v21  ;;  %2055 = vmatprep.mubr.bf16.mxu0 %v4001_v22  ;;  %v4093_v19 = vld [vmem:[%s6272_s0 + $0x31c] ss:$56 sps:$4 sm:$0xff]   ;;  %v4088_v21 = vld [vmem:[%s6271_s1 + $0x3a0] ss:$8 sps:$4 sm:$0xff]  }
  0x4e   :  { %2168 = vmatprep.mubr.bf16.mxu1 %v4003_v23  ;;  %v4099_v22 = vld [vmem:[%s6271_s1 + $0x294] ss:$8 sps:$4 sm:$0xff]  }
  0x4f   :  { %2236 = vmatpush1.bf16.msra.mxu0 %v3995_v24  ;;  %v4102_v23 = vld [vmem:[%s6271_s1 + $0x394] ss:$8 sps:$4 sm:$0xff]   ;;  %v4095_v24 = vld [vmem:[%s6272_s0 + $0x310] ss:$56 sps:$4 sm:$0xff]  }
  0x50   :  { %2349 = vmatpush1.bf16.msra.mxu1 %v3998_v25  ;;  %2237 = vmatprep.subr.bf16.mxu0 %v4009_v26  ;;  %v4096_v25 = vld [vmem:[%s6272_s0 + $0x318] ss:$56 sps:$4 sm:$0xff]  }
  0x51   :  { %2350 = vmatprep.subr.bf16.mxu1 %v4012_v27  ;;  %v4097_v26 = vld [vmem:[%s6271_s1 + $0x290] ss:$8 sps:$4 sm:$0xff]  }
  0x52   :  { %2056 = vmatmul.mubr.bf16.gmra.mxu0 %v4005_v28  ;;  %v4100_v27 = vld [vmem:[%s6271_s1 + $0x390] ss:$8 sps:$4 sm:$0xff]   ;;  %v4105_v28 = vld [vmem:[%s6271_s1 + $0x284] ss:$8 sps:$4 sm:$0xff]  }
  0x53   :  { %2169 = vmatmul.mubr.bf16.gmra.mxu1 %v4006_v29  ;;  %2238 = vmatpush1.bf16.msra.mxu0 %v4007_v30  ;;  %v4108_v29 = vld [vmem:[%s6271_s1 + $0x384] ss:$8 sps:$4 sm:$0xff]  }
  0x54   :  { %2351 = vmatpush1.bf16.msra.mxu1 %v4010_v31  ;;  %2239 = vmatprep.subr.bf16.mxu0 %v4015_v32  ;;  %v4111_v30 = vld [vmem:[%s6272_s0 + $0x14] ss:$56 sps:$4 sm:$0xff]   ;;  %v4103_v32 = vld [vmem:[%s6271_s1 + $0x280] ss:$8 sps:$4 sm:$0xff]  }
  0x55   :  { %2352 = vmatprep.subr.bf16.mxu1 %v4018_v33  ;;  %2065 = vmatprep.mubr.bf16.mxu0 %v4019_v34  ;;  %v4114_v31 = vld [vmem:[%s6272_s0 + $0x1c] ss:$56 sps:$4 sm:$0xff]   ;;  %v4106_v33 = vld [vmem:[%s6271_s1 + $0x380] ss:$8 sps:$4 sm:$0xff]  }
  0x56   :  { %2178 = vmatprep.mubr.bf16.mxu1 %v4021_v35  ;;  %v4117_v34 = vld [vmem:[%s6271_s1 + $0x474] ss:$8 sps:$4 sm:$0xff]  }
  0x57   :  { %2240 = vmatpush1.bf16.msra.mxu0 %v4013_v36  ;;  %v4120_v35 = vld [vmem:[%s6271_s1 + $0x574] ss:$8 sps:$4 sm:$0xff]   ;;  %v4109_v36 = vld [vmem:[%s6272_s0 + $0x10] ss:$56 sps:$4 sm:$0xff]  }
  0x58   :  { %2353 = vmatpush1.bf16.msra.mxu1 %v4016_v37  ;;  %2241 = vmatprep.subr.bf16.mxu0 %v4027_v38  ;;  %v4112_v37 = vld [vmem:[%s6272_s0 + $0x18] ss:$56 sps:$4 sm:$0xff]  }
  0x59   :  { %2354 = vmatprep.subr.bf16.mxu1 %v4030_v39  ;;  %v4115_v38 = vld [vmem:[%s6271_s1 + $0x470] ss:$8 sps:$4 sm:$0xff]  }
  0x5a   :  { %2066 = vmatmul.mubr.bf16.gmra.mxu0 %v4023_v40  ;;  %v4118_v39 = vld [vmem:[%s6271_s1 + $0x570] ss:$8 sps:$4 sm:$0xff]   ;;  %v4123_v40 = vld [vmem:[%s6271_s1 + $0x464] ss:$8 sps:$4 sm:$0xff]  }
  0x5b   :  { %2179 = vmatmul.mubr.bf16.gmra.mxu1 %v4024_v41  ;;  %2242 = vmatpush1.bf16.msra.mxu0 %v4025_v42  ;;  %v4126_v41 = vld [vmem:[%s6271_s1 + $0x564] ss:$8 sps:$4 sm:$0xff]  }
  0x5c   :  { %2355 = vmatpush1.bf16.msra.mxu1 %v4028_v43  ;;  %2243 = vmatprep.subr.bf16.mxu0 %v4033_v44  ;;  %v4127_v42 = vld [vmem:[%s6272_s0 + $0x84] ss:$56 sps:$4 sm:$0xff]   ;;  %v4121_v44 = vld [vmem:[%s6271_s1 + $0x460] ss:$8 sps:$4 sm:$0xff]  }
  0x5d   :  { %2356 = vmatprep.subr.bf16.mxu1 %v4036_v45  ;;  %2075 = vmatprep.mubr.bf16.mxu0 %v4037_v46  ;;  %v4129_v43 = vld [vmem:[%s6272_s0 + $0x8c] ss:$56 sps:$4 sm:$0xff]   ;;  %v4124_v45 = vld [vmem:[%s6271_s1 + $0x560] ss:$8 sps:$4 sm:$0xff]   ;;  %v4135_v46 = vld [vmem:[%s6271_s1 + $0x454] ss:$8 sps:$4 sm:$0xff]  }
  0x5e   :  { %2188 = vmatprep.mubr.bf16.mxu1 %v4039_v47  ;;  %v4138_v47 = vld [vmem:[%s6271_s1 + $0x554] ss:$8 sps:$4 sm:$0xff]  }
  0x5f   :  { %2244 = vmatpush1.bf16.msra.mxu0 %v4031_v48  ;;  %v4131_v48 = vld [vmem:[%s6272_s0 + $0x80] ss:$56 sps:$4 sm:$0xff]  }
  0x60   :  { %2357 = vmatpush1.bf16.msra.mxu1 %v4034_v49  ;;  %2245 = vmatprep.subr.bf16.mxu0 %v4045_v50  ;;  %v4132_v49 = vld [vmem:[%s6272_s0 + $0x88] ss:$56 sps:$4 sm:$0xff]   ;;  %v4133_v50 = vld [vmem:[%s6271_s1 + $0x450] ss:$8 sps:$4 sm:$0xff]  }
  0x61   :  { %2358 = vmatprep.subr.bf16.mxu1 %v4048_v51  ;;  %v4136_v51 = vld [vmem:[%s6271_s1 + $0x550] ss:$8 sps:$4 sm:$0xff]  }
  0x62   :  { %2076 = vmatmul.mubr.bf16.gmra.mxu0 %v4041_v52  ;;  %v4141_v52 = vld [vmem:[%s6271_s1 + $0x444] ss:$8 sps:$4 sm:$0xff]  }
  0x63   :  { %2189 = vmatmul.mubr.bf16.gmra.mxu1 %v4042_v53  ;;  %2246 = vmatpush2.bf16.msra.mxu0 %v4043_v54  ;;  %v4144_v53 = vld [vmem:[%s6271_s1 + $0x544] ss:$8 sps:$4 sm:$0xff]  }
  0x64   :  { %2359 = vmatpush2.bf16.msra.mxu1 %v4046_v55  ;;  %2247 = vmatprep.subr.bf16.mxu0 %v4051_v56  ;;  %v4145_v54 = vld [vmem:[%s6272_s0 + $0xf4] ss:$56 sps:$4 sm:$0xff]   ;;  %v4139_v56 = vld [vmem:[%s6271_s1 + $0x440] ss:$8 sps:$4 sm:$0xff]  }
  0x65   :  { %2360 = vmatprep.subr.bf16.mxu1 %v4054_v57  ;;  %2085 = vmatprep.mubr.bf16.mxu0 %v4055_v58  ;;  %v4147_v55 = vld [vmem:[%s6272_s0 + $0xfc] ss:$56 sps:$4 sm:$0xff]   ;;  %v4142_v57 = vld [vmem:[%s6271_s1 + $0x540] ss:$8 sps:$4 sm:$0xff]  }
  0x66   :  { %2198 = vmatprep.mubr.bf16.mxu1 %v4057_v59  ;;  %v4153_v58 = vld [vmem:[%s6271_s1 + $0x434] ss:$8 sps:$4 sm:$0xff]  }
  0x67   :  { %2248 = vmatpush2.bf16.msra.mxu0 %v4049_v60  ;;  %v4156_v59 = vld [vmem:[%s6271_s1 + $0x534] ss:$8 sps:$4 sm:$0xff]   ;;  %v4149_v60 = vld [vmem:[%s6272_s0 + $0xf0] ss:$56 sps:$4 sm:$0xff]  }
  0x68   :  { %2361 = vmatpush2.bf16.msra.mxu1 %v4052_v61  ;;  %2249 = vmatprep.subr.bf16.mxu0 %v4063_v62  ;;  %v4150_v61 = vld [vmem:[%s6272_s0 + $0xf8] ss:$56 sps:$4 sm:$0xff]  }
  0x69   :  { %2362 = vmatprep.subr.bf16.mxu1 %v4066_v63  ;;  %v4151_v62 = vld [vmem:[%s6271_s1 + $0x430] ss:$8 sps:$4 sm:$0xff]  }
  0x6a   :  { %2086 = vmatmul.mubr.bf16.gmra.mxu0 %v4059_v0  ;;  %v4154_v63 = vld [vmem:[%s6271_s1 + $0x530] ss:$8 sps:$4 sm:$0xff]   ;;  %v4159_v0 = vld [vmem:[%s6271_s1 + $0x424] ss:$8 sps:$4 sm:$0xff]  }
  0x6b   :  { %2199 = vmatmul.mubr.bf16.gmra.mxu1 %v4060_v1  ;;  %2250 = vmatpush2.bf16.msra.mxu0 %v4061_v2  ;;  %v4162_v1 = vld [vmem:[%s6271_s1 + $0x524] ss:$8 sps:$4 sm:$0xff]  }
  0x6c   :  { %2363 = vmatpush2.bf16.msra.mxu1 %v4064_v3  ;;  %2251 = vmatprep.subr.bf16.mxu0 %v4069_v4  ;;  %v4163_v2 = vld [vmem:[%s6272_s0 + $0x164] ss:$56 sps:$4 sm:$0xff]   ;;  %v4157_v4 = vld [vmem:[%s6271_s1 + $0x420] ss:$8 sps:$4 sm:$0xff]  }
  0x6d   :  { %2364 = vmatprep.subr.bf16.mxu1 %v4072_v5  ;;  %2095 = vmatprep.mubr.bf16.mxu0 %v4073_v6  ;;  %v4165_v3 = vld [vmem:[%s6272_s0 + $0x16c] ss:$56 sps:$4 sm:$0xff]   ;;  %v4160_v5 = vld [vmem:[%s6271_s1 + $0x520] ss:$8 sps:$4 sm:$0xff]   ;;  %v4171_v6 = vld [vmem:[%s6271_s1 + $0x414] ss:$8 sps:$4 sm:$0xff]  }
  0x6e   :  { %2208 = vmatprep.mubr.bf16.mxu1 %v4075_v7  ;;  %v4174_v7 = vld [vmem:[%s6271_s1 + $0x514] ss:$8 sps:$4 sm:$0xff]  }
  0x6f   :  { %2252 = vmatpush2.bf16.msra.mxu0 %v4067_v8  ;;  %v4167_v8 = vld [vmem:[%s6272_s0 + $0x160] ss:$56 sps:$4 sm:$0xff]  }
  0x70   :  { %2365 = vmatpush2.bf16.msra.mxu1 %v4070_v9  ;;  %2253 = vmatprep.subr.bf16.mxu0 %v4081_v10  ;;  %v4168_v9 = vld [vmem:[%s6272_s0 + $0x168] ss:$56 sps:$4 sm:$0xff]   ;;  %v4169_v10 = vld [vmem:[%s6271_s1 + $0x410] ss:$8 sps:$4 sm:$0xff]  }
  0x71   :  { %2366 = vmatprep.subr.bf16.mxu1 %v4084_v11  ;;  %v4172_v11 = vld [vmem:[%s6271_s1 + $0x510] ss:$8 sps:$4 sm:$0xff]  }
  0x72   :  { %2096 = vmatmul.mubr.bf16.gmra.mxu0 %v4077_v12  ;;  %v4177_v12 = vld [vmem:[%s6271_s1 + $0x404] ss:$8 sps:$4 sm:$0xff]  }
  0x73   :  { %2209 = vmatmul.mubr.bf16.gmra.mxu1 %v4078_v13  ;;  %2254 = vmatpush2.bf16.msra.mxu0 %v4079_v14  ;;  %v4180_v13 = vld [vmem:[%s6271_s1 + $0x504] ss:$8 sps:$4 sm:$0xff]  }
  0x74   :  { %2367 = vmatpush2.bf16.msra.mxu1 %v4082_v15  ;;  %2255 = vmatprep.subr.bf16.mxu0 %v4087_v16  ;;  %v4181_v14 = vld [vmem:[%s6272_s0 + $0x1d4] ss:$56 sps:$4 sm:$0xff]   ;;  %v4175_v16 = vld [vmem:[%s6271_s1 + $0x400] ss:$8 sps:$4 sm:$0xff]  }
  0x75   :  { %2368 = vmatprep.subr.bf16.mxu1 %v4090_v17  ;;  %2105 = vmatprep.mubr.bf16.mxu0 %v4091_v18  ;;  %v4183_v15 = vld [vmem:[%s6272_s0 + $0x1dc] ss:$56 sps:$4 sm:$0xff]   ;;  %v4178_v17 = vld [vmem:[%s6271_s1 + $0x500] ss:$8 sps:$4 sm:$0xff]  }
  0x76   :  { %2218 = vmatprep.mubr.bf16.mxu1 %v4093_v19  ;;  %v4189_v18 = vld [vmem:[%s6271_s1 + $0x4f4] ss:$8 sps:$4 sm:$0xff]  }
  0x77   :  { %2256 = vmatpush2.bf16.msra.mxu0 %v4085_v20  ;;  %v4192_v19 = vld [vmem:[%s6271_s1 + $0x5f4] ss:$8 sps:$4 sm:$0xff]   ;;  %v4185_v20 = vld [vmem:[%s6272_s0 + $0x1d0] ss:$56 sps:$4 sm:$0xff]  }
  0x78   :  { %2369 = vmatpush2.bf16.msra.mxu1 %v4088_v21  ;;  %2257 = vmatprep.subr.bf16.mxu0 %v4099_v22  ;;  %v4186_v21 = vld [vmem:[%s6272_s0 + $0x1d8] ss:$56 sps:$4 sm:$0xff]  }
  0x79   :  { %2370 = vmatprep.subr.bf16.mxu1 %v4102_v23  ;;  %v4187_v22 = vld [vmem:[%s6271_s1 + $0x4f0] ss:$8 sps:$4 sm:$0xff]  }
  0x7a   :  { %2106 = vmatmul.mubr.bf16.gmra.mxu0 %v4095_v24  ;;  %v4190_v23 = vld [vmem:[%s6271_s1 + $0x5f0] ss:$8 sps:$4 sm:$0xff]   ;;  %v4195_v24 = vld [vmem:[%s6271_s1 + $0x4e4] ss:$8 sps:$4 sm:$0xff]  }
  0x7b   :  { %2219 = vmatmul.mubr.bf16.gmra.mxu1 %v4096_v25  ;;  %2258 = vmatpush2.bf16.msra.mxu0 %v4097_v26  ;;  %v4198_v25 = vld [vmem:[%s6271_s1 + $0x5e4] ss:$8 sps:$4 sm:$0xff]  }
  0x7c   :  { %2371 = vmatpush2.bf16.msra.mxu1 %v4100_v27  ;;  %2259 = vmatprep.subr.bf16.mxu0 %v4105_v28  ;;  %v4199_v26 = vld [vmem:[%s6272_s0 + $0x244] ss:$56 sps:$4 sm:$0xff]   ;;  %v4193_v28 = vld [vmem:[%s6271_s1 + $0x4e0] ss:$8 sps:$4 sm:$0xff]  }
  0x7d   :  { %2372 = vmatprep.subr.bf16.mxu1 %v4108_v29  ;;  %2261 = vmatprep.mubr.bf16.mxu0 %v4111_v30  ;;  %v4201_v27 = vld [vmem:[%s6272_s0 + $0x24c] ss:$56 sps:$4 sm:$0xff]   ;;  %v4196_v29 = vld [vmem:[%s6271_s1 + $0x5e0] ss:$8 sps:$4 sm:$0xff]   ;;  %v4207_v30 = vld [vmem:[%s6271_s1 + $0x4d4] ss:$8 sps:$4 sm:$0xff]  }
  0x7e   :  { %2374 = vmatprep.mubr.bf16.mxu1 %v4114_v31  ;;  %v4210_v31 = vld [vmem:[%s6271_s1 + $0x5d4] ss:$8 sps:$4 sm:$0xff]  }
  0x7f   :  { %2260 = vmatpush2.bf16.msra.mxu0 %v4103_v32  ;;  %v4203_v32 = vld [vmem:[%s6272_s0 + $0x240] ss:$56 sps:$4 sm:$0xff]  }
  0x80   :  { %2373 = vmatpush2.bf16.msra.mxu1 %v4106_v33  ;;  %2455 = vmatprep.subr.bf16.mxu0 %v4117_v34  ;;  %v4204_v33 = vld [vmem:[%s6272_s0 + $0x248] ss:$56 sps:$4 sm:$0xff]   ;;  %v4205_v34 = vld [vmem:[%s6271_s1 + $0x4d0] ss:$8 sps:$4 sm:$0xff]  }
  0x81   :  { %2568 = vmatprep.subr.bf16.mxu1 %v4120_v35  ;;  %v4208_v35 = vld [vmem:[%s6271_s1 + $0x5d0] ss:$8 sps:$4 sm:$0xff]  }
  0x82   :  { %2262 = vmatmul.mubr.bf16.vlgmr.msra.gmra.mxu0 %v4109_v36  ;;  %v4213_v36 = vld [vmem:[%s6271_s1 + $0x4c4] ss:$8 sps:$4 sm:$0xff]  }
  0x83   :  { %2375 = vmatmul.mubr.bf16.vlgmr.msra.gmra.mxu1 %v4112_v37  ;;  %2456 = vmatpush1.bf16.msra.mxu0 %v4115_v38  ;;  %v4216_v37 = vld [vmem:[%s6271_s1 + $0x5c4] ss:$8 sps:$4 sm:$0xff]  }
  0x84   :  { %2569 = vmatpush1.bf16.msra.mxu1 %v4118_v39  ;;  %2457 = vmatprep.subr.bf16.mxu0 %v4123_v40  ;;  %v4217_v38 = vld [vmem:[%s6272_s0 + $0x2b4] ss:$56 sps:$4 sm:$0xff]   ;;  %v4211_v40 = vld [vmem:[%s6271_s1 + $0x4c0] ss:$8 sps:$4 sm:$0xff]  }
  0x85   :  { %2570 = vmatprep.subr.bf16.mxu1 %v4126_v41  ;;  %2271 = vmatprep.mubr.bf16.mxu0 %v4127_v42  ;;  %v4219_v39 = vld [vmem:[%s6272_s0 + $0x2bc] ss:$56 sps:$4 sm:$0xff]   ;;  %v4214_v41 = vld [vmem:[%s6271_s1 + $0x5c0] ss:$8 sps:$4 sm:$0xff]  }
  0x86   :  { %2384 = vmatprep.mubr.bf16.mxu1 %v4129_v43  ;;  %v4225_v42 = vld [vmem:[%s6271_s1 + $0x4b4] ss:$8 sps:$4 sm:$0xff]  }
  0x87   :  { %2458 = vmatpush1.bf16.msra.mxu0 %v4121_v44  ;;  %v4228_v43 = vld [vmem:[%s6271_s1 + $0x5b4] ss:$8 sps:$4 sm:$0xff]   ;;  %v4221_v44 = vld [vmem:[%s6272_s0 + $0x2b0] ss:$56 sps:$4 sm:$0xff]  }
  0x88   :  { %2571 = vmatpush1.bf16.msra.mxu1 %v4124_v45  ;;  %2459 = vmatprep.subr.bf16.mxu0 %v4135_v46  ;;  %v4222_v45 = vld [vmem:[%s6272_s0 + $0x2b8] ss:$56 sps:$4 sm:$0xff]  }
  0x89   :  { %2572 = vmatprep.subr.bf16.mxu1 %v4138_v47  ;;  %v4223_v46 = vld [vmem:[%s6271_s1 + $0x4b0] ss:$8 sps:$4 sm:$0xff]  }
  0x8a   :  { %2272 = vmatmul.mubr.bf16.gmra.mxu0 %v4131_v48  ;;  %v4226_v47 = vld [vmem:[%s6271_s1 + $0x5b0] ss:$8 sps:$4 sm:$0xff]   ;;  %v4231_v48 = vld [vmem:[%s6271_s1 + $0x4a4] ss:$8 sps:$4 sm:$0xff]  }
  0x8b   :  { %2385 = vmatmul.mubr.bf16.gmra.mxu1 %v4132_v49  ;;  %2460 = vmatpush1.bf16.msra.mxu0 %v4133_v50  ;;  %v4234_v49 = vld [vmem:[%s6271_s1 + $0x5a4] ss:$8 sps:$4 sm:$0xff]  }
  0x8c   :  { %2573 = vmatpush1.bf16.msra.mxu1 %v4136_v51  ;;  %2461 = vmatprep.subr.bf16.mxu0 %v4141_v52  ;;  %v4235_v50 = vld [vmem:[%s6272_s0 + $0x324] ss:$56 sps:$4 sm:$0xff]   ;;  %v4229_v52 = vld [vmem:[%s6271_s1 + $0x4a0] ss:$8 sps:$4 sm:$0xff]  }
  0x8d   :  { %2574 = vmatprep.subr.bf16.mxu1 %v4144_v53  ;;  %2281 = vmatprep.mubr.bf16.mxu0 %v4145_v54  ;;  %v4237_v51 = vld [vmem:[%s6272_s0 + $0x32c] ss:$56 sps:$4 sm:$0xff]   ;;  %v4232_v53 = vld [vmem:[%s6271_s1 + $0x5a0] ss:$8 sps:$4 sm:$0xff]   ;;  %v4243_v54 = vld [vmem:[%s6271_s1 + $0x494] ss:$8 sps:$4 sm:$0xff]  }
  0x8e   :  { %2394 = vmatprep.mubr.bf16.mxu1 %v4147_v55  ;;  %v4239_v55 = vld [vmem:[%s6272_s0 + $0x320] ss:$56 sps:$4 sm:$0xff]  }
  0x8f   :  { %2462 = vmatpush1.bf16.msra.mxu0 %v4139_v56  ;;  %v4246_v56 = vld [vmem:[%s6271_s1 + $0x594] ss:$8 sps:$4 sm:$0xff]  }
  0x90   :  { %2575 = vmatpush1.bf16.msra.mxu1 %v4142_v57  ;;  %2463 = vmatprep.subr.bf16.mxu0 %v4153_v58  ;;  %v4240_v57 = vld [vmem:[%s6272_s0 + $0x328] ss:$56 sps:$4 sm:$0xff]   ;;  %v4241_v58 = vld [vmem:[%s6271_s1 + $0x490] ss:$8 sps:$4 sm:$0xff]  }
  0x91   :  { %2576 = vmatprep.subr.bf16.mxu1 %v4156_v59  ;;  %v4244_v59 = vld [vmem:[%s6271_s1 + $0x590] ss:$8 sps:$4 sm:$0xff]  }
  0x92   :  { %2282 = vmatmul.mubr.bf16.gmra.mxu0 %v4149_v60  ;;  %v4249_v60 = vld [vmem:[%s6271_s1 + $0x484] ss:$8 sps:$4 sm:$0xff]  }
  0x93   :  { %2395 = vmatmul.mubr.bf16.gmra.mxu1 %v4150_v61  ;;  %2464 = vmatpush1.bf16.msra.mxu0 %v4151_v62  ;;  %v4252_v61 = vld [vmem:[%s6271_s1 + $0x584] ss:$8 sps:$4 sm:$0xff]  }
  0x94   :  { %2577 = vmatpush1.bf16.msra.mxu1 %v4154_v63  ;;  %2465 = vmatprep.subr.bf16.mxu0 %v4159_v0  ;;  %v4255_v62 = vld [vmem:[%s6272_s0 + $0x24] ss:$56 sps:$4 sm:$0xff]   ;;  %v4247_v0 = vld [vmem:[%s6271_s1 + $0x480] ss:$8 sps:$4 sm:$0xff]  }
  0x95   :  { %2578 = vmatprep.subr.bf16.mxu1 %v4162_v1  ;;  %2291 = vmatprep.mubr.bf16.mxu0 %v4163_v2  ;;  %v4258_v63 = vld [vmem:[%s6272_s0 + $0x2c] ss:$56 sps:$4 sm:$0xff]   ;;  %v4250_v1 = vld [vmem:[%s6271_s1 + $0x580] ss:$8 sps:$4 sm:$0xff]   ;;  %v4261_v2 = vld [vmem:[%s6271_s1 + $0x674] ss:$8 sps:$4 sm:$0xff]  }
  0x96   :  { %2404 = vmatprep.mubr.bf16.mxu1 %v4165_v3  ;;  %v4253_v3 = vld [vmem:[%s6272_s0 + $0x20] ss:$56 sps:$4 sm:$0xff]  }
  0x97   :  { %2466 = vmatpush1.bf16.msra.mxu0 %v4157_v4  ;;  %v4256_v4 = vld [vmem:[%s6272_s0 + $0x28] ss:$56 sps:$4 sm:$0xff]  }
  0x98   :  { %2579 = vmatpush1.bf16.msra.mxu1 %v4160_v5  ;;  %2467 = vmatprep.subr.bf16.mxu0 %v4171_v6  ;;  %v4259_v5 = vld [vmem:[%s6271_s1 + $0x670] ss:$8 sps:$4 sm:$0xff]   ;;  %v4264_v6 = vld [vmem:[%s6271_s1 + $0x664] ss:$8 sps:$4 sm:$0xff]  }
  0x99   :  { %2580 = vmatprep.subr.bf16.mxu1 %v4174_v7  ;;  %v4265_v7 = vld [vmem:[%s6272_s0 + $0x94] ss:$56 sps:$4 sm:$0xff]  }
  0x9a   :  { %2292 = vmatmul.mubr.bf16.gmra.mxu0 %v4167_v8  ;;  %v4267_v8 = vld [vmem:[%s6272_s0 + $0x9c] ss:$56 sps:$4 sm:$0xff]  }
  0x9b   :  { %2405 = vmatmul.mubr.bf16.gmra.mxu1 %v4168_v9  ;;  %2468 = vmatpush1.bf16.msra.mxu0 %v4169_v10  ;;  %v4262_v9 = vld [vmem:[%s6271_s1 + $0x660] ss:$8 sps:$4 sm:$0xff]   ;;  %v4273_v10 = vld [vmem:[%s6271_s1 + $0x654] ss:$8 sps:$4 sm:$0xff]  }
  0x9c   :  { %2581 = vmatpush1.bf16.msra.mxu1 %v4172_v11  ;;  %2469 = vmatprep.subr.bf16.mxu0 %v4177_v12  ;;  %v4269_v11 = vld [vmem:[%s6272_s0 + $0x90] ss:$56 sps:$4 sm:$0xff]  }
  0x9d   :  { %2582 = vmatprep.subr.bf16.mxu1 %v4180_v13  ;;  %2301 = vmatprep.mubr.bf16.mxu0 %v4181_v14  ;;  %v4270_v12 = vld [vmem:[%s6272_s0 + $0x98] ss:$56 sps:$4 sm:$0xff]   ;;  %v4274_v14 = vld [vmem:[%s6272_s0 + $0x104] ss:$56 sps:$4 sm:$0xff]  }
  0x9e   :  { %2414 = vmatprep.mubr.bf16.mxu1 %v4183_v15  ;;  %v4271_v13 = vld [vmem:[%s6271_s1 + $0x650] ss:$8 sps:$4 sm:$0xff]   ;;  %v4276_v15 = vld [vmem:[%s6272_s0 + $0x10c] ss:$56 sps:$4 sm:$0xff]  }
  0x9f   :  { %2470 = vmatpush1.bf16.msra.mxu0 %v4175_v16  ;;  %v4282_v16 = vld [vmem:[%s6271_s1 + $0x644] ss:$8 sps:$4 sm:$0xff]  }
  0xa0   :  { %2583 = vmatpush1.bf16.msra.mxu1 %v4178_v17  ;;  %2471 = vmatprep.subr.bf16.mxu0 %v4189_v18  ;;  %v4280_v17 = vld [vmem:[%s6271_s1 + $0x640] ss:$8 sps:$4 sm:$0xff]   ;;  %v4285_v18 = vld [vmem:[%s6271_s1 + $0x634] ss:$8 sps:$4 sm:$0xff]  }
  0xa1   :  { %2584 = vmatprep.subr.bf16.mxu1 %v4192_v19  ;;  %v4278_v19 = vld [vmem:[%s6272_s0 + $0x100] ss:$56 sps:$4 sm:$0xff]  }
  0xa2   :  { %2302 = vmatmul.mubr.bf16.gmra.mxu0 %v4185_v20  ;;  %v4279_v20 = vld [vmem:[%s6272_s0 + $0x108] ss:$56 sps:$4 sm:$0xff]  }
  0xa3   :  { %2415 = vmatmul.mubr.bf16.gmra.mxu1 %v4186_v21  ;;  %2472 = vmatpush2.bf16.msra.mxu0 %v4187_v22  ;;  %v4286_v21 = vld [vmem:[%s6272_s0 + $0x174] ss:$56 sps:$4 sm:$0xff]  }
  0xa4   :  { %2585 = vmatpush2.bf16.msra.mxu1 %v4190_v23  ;;  %2473 = vmatprep.subr.bf16.mxu0 %v4195_v24  ;;  %v4288_v22 = vld [vmem:[%s6272_s0 + $0x17c] ss:$56 sps:$4 sm:$0xff]   ;;  %v4283_v23 = vld [vmem:[%s6271_s1 + $0x630] ss:$8 sps:$4 sm:$0xff]   ;;  %v4294_v24 = vld [vmem:[%s6271_s1 + $0x624] ss:$8 sps:$4 sm:$0xff]  }
  0xa5   :  { %2586 = vmatprep.subr.bf16.mxu1 %v4198_v25  ;;  %2311 = vmatprep.mubr.bf16.mxu0 %v4199_v26  ;;  %v4292_v25 = vld [vmem:[%s6271_s1 + $0x620] ss:$8 sps:$4 sm:$0xff]   ;;  %v4303_v26 = vld [vmem:[%s6271_s1 + $0x614] ss:$8 sps:$4 sm:$0xff]  }
  0xa6   :  { %2424 = vmatprep.mubr.bf16.mxu1 %v4201_v27  ;;  %v4290_v27 = vld [vmem:[%s6272_s0 + $0x170] ss:$56 sps:$4 sm:$0xff]  }
  0xa7   :  { %2474 = vmatpush2.bf16.msra.mxu0 %v4193_v28  ;;  %v4291_v28 = vld [vmem:[%s6272_s0 + $0x178] ss:$56 sps:$4 sm:$0xff]  }
  0xa8   :  { %2587 = vmatpush2.bf16.msra.mxu1 %v4196_v29  ;;  %2475 = vmatprep.subr.bf16.mxu0 %v4207_v30  ;;  %v4295_v29 = vld [vmem:[%s6272_s0 + $0x1e4] ss:$56 sps:$4 sm:$0xff]  }
  0xa9   :  { %2588 = vmatprep.subr.bf16.mxu1 %v4210_v31  ;;  %v4297_v30 = vld [vmem:[%s6272_s0 + $0x1ec] ss:$56 sps:$4 sm:$0xff]   ;;  %v4301_v31 = vld [vmem:[%s6271_s1 + $0x610] ss:$8 sps:$4 sm:$0xff]  }
  0xaa   :  { %2312 = vmatmul.mubr.bf16.gmra.mxu0 %v4203_v32  ;;  %v4306_v32 = vld [vmem:[%s6271_s1 + $0x604] ss:$8 sps:$4 sm:$0xff]  }
  0xab   :  { %2425 = vmatmul.mubr.bf16.gmra.mxu1 %v4204_v33  ;;  %2476 = vmatpush2.bf16.msra.mxu0 %v4205_v34  ;;  %v4304_v33 = vld [vmem:[%s6271_s1 + $0x600] ss:$8 sps:$4 sm:$0xff]   ;;  %v4315_v34 = vld [vmem:[%s6271_s1 + $0x6b4] ss:$8 sps:$4 sm:$0xff]  }
  0xac   :  { %2589 = vmatpush2.bf16.msra.mxu1 %v4208_v35  ;;  %2477 = vmatprep.subr.bf16.mxu0 %v4213_v36  ;;  %v4299_v35 = vld [vmem:[%s6272_s0 + $0x1e0] ss:$56 sps:$4 sm:$0xff]  }
  0xad   :  { %2590 = vmatprep.subr.bf16.mxu1 %v4216_v37  ;;  %2321 = vmatprep.mubr.bf16.mxu0 %v4217_v38  ;;  %v4300_v36 = vld [vmem:[%s6272_s0 + $0x1e8] ss:$56 sps:$4 sm:$0xff]   ;;  %v4307_v37 = vld [vmem:[%s6272_s0 + $0x254] ss:$56 sps:$4 sm:$0xff]  }
  0xae   :  { %2434 = vmatprep.mubr.bf16.mxu1 %v4219_v39  ;;  %v4309_v38 = vld [vmem:[%s6272_s0 + $0x25c] ss:$56 sps:$4 sm:$0xff]   ;;  %v4313_v39 = vld [vmem:[%s6271_s1 + $0x6b0] ss:$8 sps:$4 sm:$0xff]  }
  0xaf   :  { %2478 = vmatpush2.bf16.msra.mxu0 %v4211_v40  ;;  %v4324_v40 = vld [vmem:[%s6271_s1 + $0x6a4] ss:$8 sps:$4 sm:$0xff]  }
  0xb0   :  { %2591 = vmatpush2.bf16.msra.mxu1 %v4214_v41  ;;  %2479 = vmatprep.subr.bf16.mxu0 %v4225_v42  ;;  %v4322_v41 = vld [vmem:[%s6271_s1 + $0x6a0] ss:$8 sps:$4 sm:$0xff]   ;;  %v4327_v42 = vld [vmem:[%s6271_s1 + $0x694] ss:$8 sps:$4 sm:$0xff]  }
  0xb1   :  { %2592 = vmatprep.subr.bf16.mxu1 %v4228_v43  ;;  %v4311_v43 = vld [vmem:[%s6272_s0 + $0x250] ss:$56 sps:$4 sm:$0xff]  }
  0xb2   :  { %2322 = vmatmul.mubr.bf16.gmra.mxu0 %v4221_v44  ;;  %v4312_v44 = vld [vmem:[%s6272_s0 + $0x258] ss:$56 sps:$4 sm:$0xff]  }
  0xb3   :  { %2435 = vmatmul.mubr.bf16.gmra.mxu1 %v4222_v45  ;;  %2480 = vmatpush2.bf16.msra.mxu0 %v4223_v46  ;;  %v4316_v45 = vld [vmem:[%s6272_s0 + $0x2c4] ss:$56 sps:$4 sm:$0xff]  }
  0xb4   :  { %2593 = vmatpush2.bf16.msra.mxu1 %v4226_v47  ;;  %2481 = vmatprep.subr.bf16.mxu0 %v4231_v48  ;;  %v4318_v46 = vld [vmem:[%s6272_s0 + $0x2cc] ss:$56 sps:$4 sm:$0xff]   ;;  %v4325_v47 = vld [vmem:[%s6271_s1 + $0x690] ss:$8 sps:$4 sm:$0xff]  }
  0xb5   :  { %2594 = vmatprep.subr.bf16.mxu1 %v4234_v49  ;;  %2331 = vmatprep.mubr.bf16.mxu0 %v4235_v50  ;;  %v4336_v48 = vld [vmem:[%s6271_s1 + $0x684] ss:$8 sps:$4 sm:$0xff]   ;;  %v4334_v49 = vld [vmem:[%s6271_s1 + $0x680] ss:$8 sps:$4 sm:$0xff]  }
  0xb6   :  { %2444 = vmatprep.mubr.bf16.mxu1 %v4237_v51  ;;  %v4320_v50 = vld [vmem:[%s6272_s0 + $0x2c0] ss:$56 sps:$4 sm:$0xff]  }
  0xb7   :  { %2482 = vmatpush2.bf16.msra.mxu0 %v4229_v52  ;;  %v4321_v51 = vld [vmem:[%s6272_s0 + $0x2c8] ss:$56 sps:$4 sm:$0xff]   ;;  %v4328_v52 = vld [vmem:[%s6272_s0 + $0x334] ss:$56 sps:$4 sm:$0xff]  }
  0xb8   :  { %2595 = vmatpush2.bf16.msra.mxu1 %v4232_v53  ;;  %2483 = vmatprep.subr.bf16.mxu0 %v4243_v54  ;;  %v4330_v53 = vld [vmem:[%s6272_s0 + $0x33c] ss:$56 sps:$4 sm:$0xff]   ;;  %v4332_v54 = vld [vmem:[%s6272_s0 + $0x330] ss:$56 sps:$4 sm:$0xff]  }
  0xb9   :  { %2596 = vmatprep.subr.bf16.mxu1 %v4246_v56  ;;  %v4339_v56 = vld [vmem:[%s6272_s0 + $0x34] ss:$56 sps:$4 sm:$0xff]  }
  0xba   :  { %2332 = vmatmul.mubr.bf16.gmra.mxu0 %v4239_v55  ;;  %v4333_v55 = vld [vmem:[%s6272_s0 + $0x338] ss:$56 sps:$4 sm:$0xff]  }
  0xbb   :  { %2445 = vmatmul.mubr.bf16.gmra.mxu1 %v4240_v57  ;;  %2484 = vmatpush2.bf16.msra.mxu0 %v4241_v58  ;;  %v4342_v57 = vld [vmem:[%s6272_s0 + $0x1f4] ss:$56 sps:$4 sm:$0xff]   ;;  %v4337_v58 = vld [vmem:[%s6272_s0 + $0x30] ss:$56 sps:$4 sm:$0xff]  }
  0xbc   :  { %2597 = vmatpush2.bf16.msra.mxu1 %v4244_v59  ;;  %2485 = vmatprep.subr.bf16.mxu0 %v4249_v60  ;;  %v4340_v59 = vld [vmem:[%s6272_s0 + $0x1f0] ss:$56 sps:$4 sm:$0xff]   ;;  %v4343_v60 = vld [vmem:[%s6272_s0 + $0xa4] ss:$56 sps:$4 sm:$0xff]  }
  0xbd   :  { %2598 = vmatprep.subr.bf16.mxu1 %v4252_v61  ;;  %2487 = vmatprep.mubr.bf16.mxu0 %v4255_v62  ;;  %v4345_v61 = vld [vmem:[%s6272_s0 + $0x264] ss:$56 sps:$4 sm:$0xff]  }
  0xbe   :  { %2600 = vmatprep.mubr.bf16.mxu1 %v4258_v63 }
  0xbf   :  { %2486 = vmatpush2.bf16.msra.mxu0 %v4247_v0 }
  0xc0   :  { %2599 = vmatpush2.bf16.msra.mxu1 %v4250_v1  ;;  %2681 = vmatprep.subr.bf16.mxu0 %v4261_v2 }
  0xc1   :  { %3842 = vmatprep.subr.bf16.mxu1 %v4261_v2 }
  0xc2   :  { %2488 = vmatmul.mubr.bf16.vlgmr.msra.gmra.mxu0 %v4253_v3 }
  0xc3   :  { %2601 = vmatmul.mubr.bf16.vlgmr.msra.gmra.mxu1 %v4256_v4  ;;  %2682 = vmatpush1.bf16.msra.mxu0 %v4259_v5 }
  0xc4   :  { %3854 = vmatpush1.bf16.msra.mxu1 %v4259_v5  ;;  %2683 = vmatprep.subr.bf16.mxu0 %v4264_v6 }
  0xc5   :  { %2497 = vmatprep.mubr.bf16.mxu0 %v4265_v7  ;;  %2610 = vmatprep.mubr.bf16.mxu1 %v4267_v8  ;;  %v4348_v7 = vld [vmem:[%s6272_s0 + $0x260] ss:$56 sps:$4 sm:$0xff]  }
  0xc6   :  { %3843 = vmatprep.subr.bf16.mxu1 %v4264_v6  ;;  %v4347_v6 = vld [vmem:[%s6272_s0 + $0xa0] ss:$56 sps:$4 sm:$0xff]  }
  0xc7   :  { %2684 = vmatpush1.bf16.msra.mxu0 %v4262_v9 }
  0xc8   :  { %3855 = vmatpush1.bf16.msra.mxu1 %v4262_v9  ;;  %2685 = vmatprep.subr.bf16.mxu0 %v4273_v10  ;;  %v4349_v9 = vld [vmem:[%s6272_s0 + $0x114] ss:$56 sps:$4 sm:$0xff]  }
  0xc9   :  { %3844 = vmatprep.subr.bf16.mxu1 %v4273_v10  ;;  %v4351_v10 = vld [vmem:[%s6272_s0 + $0x2d4] ss:$56 sps:$4 sm:$0xff]  }
  0xca   :  { %2498 = vmatmul.mubr.bf16.gmra.mxu0 %v4269_v11 }
  0xcb   :  { %2611 = vmatmul.mubr.bf16.gmra.mxu1 %v4270_v12  ;;  %2686 = vmatpush1.bf16.msra.mxu0 %v4271_v13 }
  0xcc   :  { %2507 = vmatprep.mubr.bf16.mxu0 %v4274_v14  ;;  %2620 = vmatprep.mubr.bf16.mxu1 %v4276_v15 }
  0xcd   :  { %3856 = vmatpush1.bf16.msra.mxu1 %v4271_v13  ;;  %2687 = vmatprep.subr.bf16.mxu0 %v4282_v16 }
  0xce   :  { %3845 = vmatprep.subr.bf16.mxu1 %v4282_v16 }
  0xcf   :  { %2688 = vmatpush1.bf16.msra.mxu0 %v4280_v17 }
  0xd0   :  { %2689 = vmatprep.subr.bf16.mxu0 %v4285_v18 }
  0xd1   :  { %3857 = vmatpush1.bf16.msra.mxu1 %v4280_v17 }
  0xd2   :  { %3846 = vmatprep.subr.bf16.mxu1 %v4285_v18  ;;  %2508 = vmatmul.mubr.bf16.gmra.mxu0 %v4278_v19 }
  0xd3   :  { %2621 = vmatmul.mubr.bf16.gmra.mxu1 %v4279_v20  ;;  %2517 = vmatprep.mubr.bf16.mxu0 %v4286_v21 }
  0xd4   :  { %2630 = vmatprep.mubr.bf16.mxu1 %v4288_v22  ;;  %2690 = vmatpush1.bf16.msra.mxu0 %v4283_v23  ;;  %v4353_v22 = vld [vmem:[%s6272_s0 + $0x110] ss:$56 sps:$4 sm:$0xff]  }
  0xd5   :  { %3858 = vmatpush1.bf16.msra.mxu1 %v4283_v23  ;;  %2691 = vmatprep.subr.bf16.mxu0 %v4294_v24  ;;  %v4354_v23 = vld [vmem:[%s6272_s0 + $0x2d0] ss:$56 sps:$4 sm:$0xff]  }
  0xd6   :  { %3847 = vmatprep.subr.bf16.mxu1 %v4294_v24 }
  0xd8   :  { %2692 = vmatpush1.bf16.msra.mxu0 %v4292_v25 }
  0xd9   :  { %3859 = vmatpush1.bf16.msra.mxu1 %v4292_v25  ;;  %2693 = vmatprep.subr.bf16.mxu0 %v4303_v26  ;;  %v4355_v25 = vld [vmem:[%s6272_s0 + $0x184] ss:$56 sps:$4 sm:$0xff]  }
  0xda   :  { %3848 = vmatprep.subr.bf16.mxu1 %v4303_v26  ;;  %2518 = vmatmul.mubr.bf16.gmra.mxu0 %v4290_v27  ;;  %v4357_v26 = vld [vmem:[%s6272_s0 + $0x344] ss:$56 sps:$4 sm:$0xff]  }
  0xdb   :  { %2631 = vmatmul.mubr.bf16.gmra.mxu1 %v4291_v28  ;;  %2527 = vmatprep.mubr.bf16.mxu0 %v4295_v29 }
  0xdc   :  { %2640 = vmatprep.mubr.bf16.mxu1 %v4297_v30  ;;  %2694 = vmatpush1.bf16.msra.mxu0 %v4301_v31 }
  0xdd   :  { %3860 = vmatpush1.bf16.msra.mxu1 %v4301_v31  ;;  %2695 = vmatprep.subr.bf16.mxu0 %v4306_v32 }
  0xde   :  { %3849 = vmatprep.subr.bf16.mxu1 %v4306_v32 }
  0xe0   :  { %2696 = vmatpush1.bf16.msra.mxu0 %v4304_v33 }
  0xe1   :  { %3861 = vmatpush1.bf16.msra.mxu1 %v4304_v33  ;;  %2705 = vmatprep.subr.bf16.mxu0 %v4315_v34 }
  0xe2   :  { %3850 = vmatprep.subr.bf16.mxu1 %v4315_v34  ;;  %2528 = vmatmul.mubr.bf16.gmra.mxu0 %v4299_v35 }
  0xe3   :  { %2641 = vmatmul.mubr.bf16.gmra.mxu1 %v4300_v36  ;;  %2537 = vmatprep.mubr.bf16.mxu0 %v4307_v37 }
  0xe4   :  { %2650 = vmatprep.mubr.bf16.mxu1 %v4309_v38  ;;  %2706 = vmatpush2.bf16.msra.mxu0 %v4313_v39  ;;  %v4359_v38 = vld [vmem:[%s6272_s0 + $0x180] ss:$56 sps:$4 sm:$0xff]  }
  0xe5   :  { %3862 = vmatpush2.bf16.msra.mxu1 %v4313_v39  ;;  %2707 = vmatprep.subr.bf16.mxu0 %v4324_v40  ;;  %v4360_v39 = vld [vmem:[%s6272_s0 + $0x340] ss:$56 sps:$4 sm:$0xff]  }
  0xe6   :  { %3851 = vmatprep.subr.bf16.mxu1 %v4324_v40 }
  0xe8   :  { %2708 = vmatpush2.bf16.msra.mxu0 %v4322_v41 }
  0xe9   :  { %3863 = vmatpush2.bf16.msra.mxu1 %v4322_v41  ;;  %2709 = vmatprep.subr.bf16.mxu0 %v4327_v42 }
  0xea   :  { %3852 = vmatprep.subr.bf16.mxu1 %v4327_v42  ;;  %2538 = vmatmul.mubr.bf16.gmra.mxu0 %v4311_v43 }
  0xeb   :  { %2651 = vmatmul.mubr.bf16.gmra.mxu1 %v4312_v44  ;;  %2547 = vmatprep.mubr.bf16.mxu0 %v4316_v45 }
  0xec   :  { %2660 = vmatprep.mubr.bf16.mxu1 %v4318_v46  ;;  %2710 = vmatpush2.bf16.msra.mxu0 %v4325_v47 }
  0xed   :  { %3864 = vmatpush2.bf16.msra.mxu1 %v4325_v47  ;;  %2711 = vmatprep.subr.bf16.mxu0 %v4336_v48 }
  0xee   :  { %3853 = vmatprep.subr.bf16.mxu1 %v4336_v48 }
  0xf0   :  { %2712 = vmatpush2.bf16.msra.mxu0 %v4334_v49 }
  0xf1   :  { %3865 = vmatpush2.bf16.msra.mxu1 %v4334_v49 }
  0xf2   :  { %2548 = vmatmul.mubr.bf16.gmra.mxu0 %v4320_v50 }
  0xf3   :  { %2661 = vmatmul.mubr.bf16.gmra.mxu1 %v4321_v51  ;;  %2557 = vmatprep.mubr.bf16.mxu0 %v4328_v52 }
  0xf4   :  { %2670 = vmatprep.mubr.bf16.mxu1 %v4330_v53 }
  0xfa   :  { %2558 = vmatmul.mubr.bf16.gmra.mxu0 %v4332_v54 }
  0xfb   :  { %2671 = vmatmul.mubr.bf16.gmra.mxu1 %v4333_v55  ;;  %3802 = vmatprep.mubr.msk.bf16.mxu0 %vm1978_vm0, %v4339_v56 }
  0xfc   :  { %3806 = vmatprep.mubr.msk.bf16.mxu1 %vm1978_vm0, %v4342_v57 }
 0x102   :  { %v2037_v62 = vpop.f32.mrf.mxu0  ;;  %2714 = vmatmul.mubr.bf16.vlgmr.msra.gmra.mxu0 %v4337_v58 }
 0x103   :  { %v2150_v63 = vpop.f32.mrf.mxu1  ;;  %2754 = vmatmul.mubr.bf16.vlgmr.msra.gmra.mxu1 %v4340_v59  ;;  %3803 = vmatprep.mubr.msk.bf16.mxu0 %vm1978_vm0, %v4343_v60 }
 0x104   :  { %v5375_v0 = vadd.f32 %v2150_v63, %v2037_v62  ;;  %3807 = vmatprep.mubr.msk.bf16.mxu1 %vm1978_vm0, %v4345_v61  ;;  %v2039_v1 = vpop.f32.mrf.mxu0 }
 0x105   :  { %v2152_v2 = vpop.f32.mrf.mxu1 }
 0x106   :  { %v5379_v3 = vadd.f32 %v2152_v2, %v2039_v1  ;;  %v2041_v4 = vpop.f32.mrf.mxu0 }
 0x107   :  { %v2154_v5 = vpop.f32.mrf.mxu1 }
 0x108   :  { %v5387_v8 = vadd.f32 %v2154_v5, %v2041_v4  ;;  %v2043_v11 = vpop.f32.mrf.mxu0 }
 0x109   :  { %v2156_v12 = vpop.f32.mrf.mxu1 }
 0x10a   :  { %v5395_v13 = vadd.f32 %v2156_v12, %v2043_v11  ;;  %v2047_v14 = vpop.f32.mrf.mxu0  ;;  %2724 = vmatmul.mubr.bf16.gmra.mxu0 %v4347_v6 }
 0x10b   :  { %v2160_v15 = vpop.f32.mrf.mxu1  ;;  %2764 = vmatmul.mubr.bf16.gmra.mxu1 %v4348_v7  ;;  %3804 = vmatprep.mubr.msk.bf16.mxu0 %vm1978_vm0, %v4349_v9 }
 0x10c   :  { %v5397_v16 = vadd.f32 %v2160_v15, %v2047_v14  ;;  %3808 = vmatprep.mubr.msk.bf16.mxu1 %vm1978_vm0, %v4351_v10  ;;  %v2049_v17 = vpop.f32.mrf.mxu0 }
 0x10d   :  { %v2162_v18 = vpop.f32.mrf.mxu1 }
 0x10e   :  { %v5401_v19 = vadd.f32 %v2162_v18, %v2049_v17  ;;  %v2051_v20 = vpop.f32.mrf.mxu0 }
 0x10f   :  { %v2164_v21 = vpop.f32.mrf.mxu1 }
 0x110   :  { %v5409_v24 = vadd.f32 %v2164_v21, %v2051_v20  ;;  %v2053_v27 = vpop.f32.mrf.mxu0 }
 0x111   :  { %v2166_v28 = vpop.f32.mrf.mxu1 }
 0x112   :  { %v5417_v29 = vadd.f32 %v2166_v28, %v2053_v27  ;;  %v2057_v30 = vpop.f32.mrf.mxu0  ;;  %2734 = vmatmul.mubr.bf16.gmra.mxu0 %v4353_v22 }
 0x113   :  { %v2170_v31 = vpop.f32.mrf.mxu1  ;;  %2774 = vmatmul.mubr.bf16.gmra.mxu1 %v4354_v23  ;;  %3805 = vmatprep.mubr.msk.bf16.mxu0 %vm1978_vm0, %v4355_v25 }
 0x114   :  { %v5419_v32 = vadd.f32 %v2170_v31, %v2057_v30  ;;  %3809 = vmatprep.mubr.msk.bf16.mxu1 %vm1978_vm0, %v4357_v26  ;;  %v2059_v33 = vpop.f32.mrf.mxu0 }
 0x115   :  { %v2172_v34 = vpop.f32.mrf.mxu1 }
 0x116   :  { %v5423_v35 = vadd.f32 %v2172_v34, %v2059_v33  ;;  %v2061_v36 = vpop.f32.mrf.mxu0 }
 0x117   :  { %v2174_v37 = vpop.f32.mrf.mxu1 }
 0x118   :  { %v5431_v40 = vadd.f32 %v2174_v37, %v2061_v36  ;;  %v2063_v41 = vpop.f32.mrf.mxu0 }
 0x119   :  { %v2176_v42 = vpop.f32.mrf.mxu1 }
 0x11a   :  { %v5433_v43 = vadd.f32 %v2176_v42, %v2063_v41  ;;  %v2067_v44 = vpop.f32.mrf.mxu0  ;;  %2744 = vmatmul.mubr.bf16.gmra.mxu0 %v4359_v38 }
 0x11b   :  { %v2180_v45 = vpop.f32.mrf.mxu1  ;;  %2784 = vmatmul.mubr.bf16.gmra.mxu1 %v4360_v39 }
 0x11c   :  { %v5435_v46 = vadd.f32 %v2180_v45, %v2067_v44  ;;  %v2069_v47 = vpop.f32.mrf.mxu0 }
 0x11d   :  { %v2182_v48 = vpop.f32.mrf.mxu1 }
 0x11e   :  { %v5437_v49 = vadd.f32 %v2182_v48, %v2069_v47  ;;  %v2071_v50 = vpop.f32.mrf.mxu0 }
 0x11f   :  { %v2184_v51 = vpop.f32.mrf.mxu1 }
 0x120   :  { %v5439_v52 = vadd.f32 %v2184_v51, %v2071_v50  ;;  %v2073_v53 = vpop.f32.mrf.mxu0 }
 0x121   :  { %v2186_v54 = vpop.f32.mrf.mxu1 }
 0x122   :  { %v5441_v55 = vadd.f32 %v2186_v54, %v2073_v53  ;;  %v2077_v56 = vpop.f32.mrf.mxu0 }
 0x123   :  { %v2190_v57 = vpop.f32.mrf.mxu1 }
 0x124   :  { %v5443_v58 = vadd.f32 %v2190_v57, %v2077_v56  ;;  %v2079_v59 = vpop.f32.mrf.mxu0 }
 0x125   :  { %v2192_v60 = vpop.f32.mrf.mxu1 }
 0x126   :  { %v5445_v61 = vadd.f32 %v2192_v60, %v2079_v59  ;;  %v2081_v62 = vpop.f32.mrf.mxu0 }
 0x127   :  { %v2194_v63 = vpop.f32.mrf.mxu1 }
 0x128   :  { %v5447_v1 = vadd.f32 %v2194_v63, %v2081_v62  ;;  %v2083_v2 = vpop.f32.mrf.mxu0 }
 0x129   :  { %v2196_v4 = vpop.f32.mrf.mxu1 }
 0x12a   :  { %v5449_v5 = vadd.f32 %v2196_v4, %v2083_v2  ;;  %v2087_v6 = vpop.f32.mrf.mxu0 }
 0x12b   :  { %v2200_v7 = vpop.f32.mrf.mxu1 }
 0x12c   :  { %v5451_v9 = vadd.f32 %v2200_v7, %v2087_v6  ;;  %v2089_v10 = vpop.f32.mrf.mxu0 }
 0x12d   :  { %v2202_v11 = vpop.f32.mrf.mxu1 }
 0x12e   :  { %v5453_v12 = vadd.f32 %v2202_v11, %v2089_v10  ;;  %v2091_v14 = vpop.f32.mrf.mxu0 }
 0x12f   :  { %v2204_v15 = vpop.f32.mrf.mxu1 }
 0x130   :  { %v5455_v17 = vadd.f32 %v2204_v15, %v2091_v14  ;;  %v2093_v18 = vpop.f32.mrf.mxu0 }
 0x131   :  { %v2206_v20 = vpop.f32.mrf.mxu1 }
 0x132   :  { %v5457_v21 = vadd.f32 %v2206_v20, %v2093_v18  ;;  %v2097_v22 = vpop.f32.mrf.mxu0 }
 0x133   :  { %v2210_v23 = vpop.f32.mrf.mxu1 }
 0x134   :  { %v5459_v25 = vadd.f32 %v2210_v23, %v2097_v22  ;;  %v2099_v26 = vpop.f32.mrf.mxu0 }
 0x135   :  { %v2212_v27 = vpop.f32.mrf.mxu1 }
 0x136   :  { %v5461_v28 = vadd.f32 %v2212_v27, %v2099_v26  ;;  %v2101_v30 = vpop.f32.mrf.mxu0 }
 0x137   :  { %v2214_v31 = vpop.f32.mrf.mxu1 }
 0x138   :  { %v5463_v33 = vadd.f32 %v2214_v31, %v2101_v30  ;;  %v2103_v34 = vpop.f32.mrf.mxu0 }
 0x139   :  { %v2216_v36 = vpop.f32.mrf.mxu1 }
 0x13a   :  { %v5465_v37 = vadd.f32 %v2216_v36, %v2103_v34  ;;  %v2107_v38 = vpop.f32.mrf.mxu0 }
 0x13b   :  { %v2220_v39 = vpop.f32.mrf.mxu1 }
 0x13c   :  { %v5467_v41 = vadd.f32 %v2220_v39, %v2107_v38  ;;  %v2109_v42 = vpop.f32.mrf.mxu0 }
 0x13d   :  { %v2222_v44 = vpop.f32.mrf.mxu1 }
 0x13e   :  { %v5469_v45 = vadd.f32 %v2222_v44, %v2109_v42  ;;  %v2111_v47 = vpop.f32.mrf.mxu0 }
 0x13f   :  { %v2224_v48 = vpop.f32.mrf.mxu1 }
 0x140   :  { %v5471_v50 = vadd.f32 %v2224_v48, %v2111_v47  ;;  %v2113_v51 = vpop.f32.mrf.mxu0 }
 0x141   :  { %v2226_v53 = vpop.f32.mrf.mxu1 }
 0x142   :  { %v5473_v54 = vadd.f32 %v2226_v53, %v2113_v51  ;;  %v2263_v56 = vpop.f32.mrf.mxu0 }
 0x143   :  { %v2376_v57 = vpop.f32.mrf.mxu1  ;;  %v2264_v59 = vadd.f32 %v2263_v56, %v5375_v0 }
 0x144   :  { %v2265_v60 = vpop.f32.mrf.mxu0 }
 0x145   :  { %v2378_v62 = vpop.f32.mrf.mxu1  ;;  %v5476_v63 = vadd.f32 %v2376_v57, %v2264_v59  ;;  %v2266_v2 = vadd.f32 %v2265_v60, %v5379_v3 }
 0x146   :  { %v2267_v4 = vpop.f32.mrf.mxu0 }
 0x147   :  { %v2380_v6 = vpop.f32.mrf.mxu1  ;;  %v5479_v7 = vadd.f32 %v2378_v62, %v2266_v2  ;;  %v2268_v10 = vadd.f32 %v2267_v4, %v5387_v8 }
 0x148   :  { %v2269_v11 = vpop.f32.mrf.mxu0 }
 0x149   :  { %v2382_v14 = vpop.f32.mrf.mxu1  ;;  %v5482_v15 = vadd.f32 %v2380_v6, %v2268_v10  ;;  %v2270_v18 = vadd.f32 %v2269_v11, %v5395_v13 }
 0x14a   :  { %v2273_v20 = vpop.f32.mrf.mxu0 }
 0x14b   :  { %v2386_v0 = vpop.f32.mrf.mxu1  ;;  %v5485_v22 = vadd.f32 %v2382_v14, %v2270_v18  ;;  %v2274_v23 = vadd.f32 %v2273_v20, %v5397_v16 }
 0x14c   :  { %v2275_v26 = vpop.f32.mrf.mxu0 }
 0x14d   :  { %v2388_v3 = vpop.f32.mrf.mxu1  ;;  %v5488_v27 = vadd.f32 %v2386_v0, %v2274_v23  ;;  %v2276_v30 = vadd.f32 %v2275_v26, %v5401_v19 }
 0x14e   :  { %v2277_v31 = vpop.f32.mrf.mxu0 }
 0x14f   :  { %v2390_v8 = vpop.f32.mrf.mxu1  ;;  %v5491_v34 = vadd.f32 %v2388_v3, %v2276_v30  ;;  %v2278_v36 = vadd.f32 %v2277_v31, %v5409_v24 }
 0x150   :  { %v2279_v38 = vpop.f32.mrf.mxu0 }
 0x151   :  { %v2392_v13 = vpop.f32.mrf.mxu1  ;;  %v5494_v39 = vadd.f32 %v2390_v8, %v2278_v36  ;;  %v2280_v42 = vadd.f32 %v2279_v38, %v5417_v29 }
 0x152   :  { %v2283_v44 = vpop.f32.mrf.mxu0 }
 0x153   :  { %v2396_v16 = vpop.f32.mrf.mxu1  ;;  %v5497_v47 = vadd.f32 %v2392_v13, %v2280_v42  ;;  %v2284_v48 = vadd.f32 %v2283_v44, %v5419_v32 }
 0x154   :  { %v2285_v51 = vpop.f32.mrf.mxu0 }
 0x155   :  { %v2398_v19 = vpop.f32.mrf.mxu1  ;;  %v5500_v53 = vadd.f32 %v2396_v16, %v2284_v48  ;;  %v2286_v56 = vadd.f32 %v2285_v51, %v5423_v35 }
 0x156   :  { %v2287_v57 = vpop.f32.mrf.mxu0 }
 0x157   :  { %v2400_v24 = vpop.f32.mrf.mxu1  ;;  %v5503_v59 = vadd.f32 %v2398_v19, %v2286_v56  ;;  %v2288_v60 = vadd.f32 %v2287_v57, %v5431_v40 }
 0x158   :  { %v2289_v62 = vpop.f32.mrf.mxu0 }
 0x159   :  { %v2402_v29 = vpop.f32.mrf.mxu1  ;;  %v5506_v2 = vadd.f32 %v2400_v24, %v2288_v60  ;;  %v2290_v4 = vadd.f32 %v2289_v62, %v5433_v43 }
 0x15a   :  { %v2293_v6 = vpop.f32.mrf.mxu0 }
 0x15b   :  { %v2406_v32 = vpop.f32.mrf.mxu1  ;;  %v5509_v10 = vadd.f32 %v2402_v29, %v2290_v4  ;;  %v2294_v11 = vadd.f32 %v2293_v6, %v5435_v46 }
 0x15c   :  { %v2295_v14 = vpop.f32.mrf.mxu0 }
 0x15d   :  { %v2408_v35 = vpop.f32.mrf.mxu1  ;;  %v5512_v18 = vadd.f32 %v2406_v32, %v2294_v11  ;;  %v2296_v20 = vadd.f32 %v2295_v14, %v5437_v49 }
 0x15e   :  { %v2297_v0 = vpop.f32.mrf.mxu0 }
 0x15f   :  { %v2410_v40 = vpop.f32.mrf.mxu1  ;;  %v5515_v23 = vadd.f32 %v2408_v35, %v2296_v20  ;;  %v2298_v26 = vadd.f32 %v2297_v0, %v5439_v52 }
 0x160   :  { %v2299_v3 = vpop.f32.mrf.mxu0 }
 0x161   :  { %v2412_v43 = vpop.f32.mrf.mxu1  ;;  %v5518_v30 = vadd.f32 %v2410_v40, %v2298_v26  ;;  %v2300_v31 = vadd.f32 %v2299_v3, %v5441_v55 }
 0x162   :  { %v2303_v8 = vpop.f32.mrf.mxu0 }
 0x163   :  { %v2416_v46 = vpop.f32.mrf.mxu1  ;;  %v5521_v36 = vadd.f32 %v2412_v43, %v2300_v31  ;;  %v2304_v38 = vadd.f32 %v2303_v8, %v5443_v58 }
 0x164   :  { %v2305_v13 = vpop.f32.mrf.mxu0 }
 0x165   :  { %6276 = vst [vmem:[#allocation2_spill] sm:$0xff] %v5521_v36  ;;  %v2418_v49 = vpop.f32.mrf.mxu1  ;;  %v5524_v42 = vadd.f32 %v2416_v46, %v2304_v38  ;;  %v2306_v44 = vadd.f32 %v2305_v13, %v5445_v61 }
 0x166   :  { %v2307_v16 = vpop.f32.mrf.mxu0 }
 0x167   :  { %v2420_v52 = vpop.f32.mrf.mxu1  ;;  %v5527_v48 = vadd.f32 %v2418_v49, %v2306_v44  ;;  %v2308_v51 = vadd.f32 %v2307_v16, %v5447_v1 }
 0x168   :  { %v2309_v19 = vpop.f32.mrf.mxu0 }
 0x169   :  { %v2422_v55 = vpop.f32.mrf.mxu1  ;;  %v5530_v56 = vadd.f32 %v2420_v52, %v2308_v51  ;;  %v2310_v57 = vadd.f32 %v2309_v19, %v5449_v5 }
 0x16a   :  { %v2313_v24 = vpop.f32.mrf.mxu0 }
 0x16b   :  { %v2426_v58 = vpop.f32.mrf.mxu1  ;;  %v5533_v60 = vadd.f32 %v2422_v55, %v2310_v57  ;;  %v2314_v62 = vadd.f32 %v2313_v24, %v5451_v9 }
 0x16c   :  { %v2315_v29 = vpop.f32.mrf.mxu0 }
 0x16d   :  { %v2428_v61 = vpop.f32.mrf.mxu1  ;;  %v5536_v4 = vadd.f32 %v2426_v58, %v2314_v62  ;;  %v2316_v6 = vadd.f32 %v2315_v29, %v5453_v12 }
 0x16e   :  { %v2317_v32 = vpop.f32.mrf.mxu0 }
 0x16f   :  { %v2430_v1 = vpop.f32.mrf.mxu1  ;;  %v5539_v11 = vadd.f32 %v2428_v61, %v2316_v6  ;;  %v2318_v14 = vadd.f32 %v2317_v32, %v5455_v17 }
 0x170   :  { %v2319_v35 = vpop.f32.mrf.mxu0 }
 0x171   :  { %v2432_v5 = vpop.f32.mrf.mxu1  ;;  %v5542_v20 = vadd.f32 %v2430_v1, %v2318_v14  ;;  %v2320_v0 = vadd.f32 %v2319_v35, %v5457_v21 }
 0x172   :  { %v2323_v40 = vpop.f32.mrf.mxu0 }
 0x173   :  { %v2436_v9 = vpop.f32.mrf.mxu1  ;;  %v5545_v26 = vadd.f32 %v2432_v5, %v2320_v0  ;;  %v2324_v3 = vadd.f32 %v2323_v40, %v5459_v25 }
 0x174   :  { %v2325_v43 = vpop.f32.mrf.mxu0 }
 0x175   :  { %v2438_v12 = vpop.f32.mrf.mxu1  ;;  %v5548_v31 = vadd.f32 %v2436_v9, %v2324_v3  ;;  %v2326_v8 = vadd.f32 %v2325_v43, %v5461_v28 }
 0x176   :  { %v2327_v46 = vpop.f32.mrf.mxu0 }
 0x177   :  { %v2440_v17 = vpop.f32.mrf.mxu1  ;;  %v5551_v38 = vadd.f32 %v2438_v12, %v2326_v8  ;;  %v2328_v13 = vadd.f32 %v2327_v46, %v5463_v33 }
 0x178   :  { %v2329_v49 = vpop.f32.mrf.mxu0 }
 0x179   :  { %v2442_v21 = vpop.f32.mrf.mxu1  ;;  %v5554_v44 = vadd.f32 %v2440_v17, %v2328_v13  ;;  %v2330_v16 = vadd.f32 %v2329_v49, %v5465_v37 }
 0x17a   :  { %v2333_v52 = vpop.f32.mrf.mxu0 }
 0x17b   :  { %6277 = vst [vmem:[#allocation3_spill] sm:$0xff] %v5554_v44  ;;  %v2446_v25 = vpop.f32.mrf.mxu1  ;;  %v5557_v51 = vadd.f32 %v2442_v21, %v2330_v16  ;;  %v2334_v19 = vadd.f32 %v2333_v52, %v5467_v41 }
 0x17c   :  { %v2335_v55 = vpop.f32.mrf.mxu0 }
 0x17d   :  { %v2448_v28 = vpop.f32.mrf.mxu1  ;;  %v5560_v57 = vadd.f32 %v2446_v25, %v2334_v19  ;;  %v2336_v24 = vadd.f32 %v2335_v55, %v5469_v45 }
 0x17e   :  { %v2337_v58 = vpop.f32.mrf.mxu0 }
 0x17f   :  { %6278 = vst [vmem:[#allocation4_spill] sm:$0xff] %v5560_v57  ;;  %v2450_v33 = vpop.f32.mrf.mxu1  ;;  %v5563_v62 = vadd.f32 %v2448_v28, %v2336_v24  ;;  %v2338_v29 = vadd.f32 %v2337_v58, %v5471_v50 }
 0x180   :  { %v2339_v61 = vpop.f32.mrf.mxu0 }
 0x181   :  { %6279 = vst [vmem:[#allocation5_spill] sm:$0xff] %v5563_v62  ;;  %v2452_v37 = vpop.f32.mrf.mxu1  ;;  %v5566_v6 = vadd.f32 %v2450_v33, %v2338_v29  ;;  %v2340_v32 = vadd.f32 %v2339_v61, %v5473_v54 }
 0x182   :  { %v2489_v1 = vpop.f32.mrf.mxu0 }
 0x183   :  { %6280 = vst [vmem:[#allocation6_spill] sm:$0xff] %v5566_v6  ;;  %v2602_v41 = vpop.f32.mrf.mxu1  ;;  %v5569_v14 = vadd.f32 %v2452_v37, %v2340_v32  ;;  %v2490_v35 = vadd.f32 %v2489_v1, %v5476_v63 }
 0x184   :  { %v5572_v5 = vpop.f32.mrf.mxu0 }
 0x185   :  { %6281 = vst [vmem:[#allocation7_spill] sm:$0xff] %v5569_v14  ;;  %v5574_v45 = vpop.f32.mrf.mxu1  ;;  %v5576_v0 = vadd.f32 %v2602_v41, %v2490_v35 }
 0x186   :  { %v2493_v40 = vpop.f32.mrf.mxu0 }
 0x187   :  { %v2606_v50 = vpop.f32.mrf.mxu1  ;;  %v2494_v9 = vadd.f32 %v2493_v40, %v5482_v15 }
 0x188   :  { %v2495_v3 = vpop.f32.mrf.mxu0 }
 0x189   :  { %v2608_v43 = vpop.f32.mrf.mxu1  ;;  %v5579_v12 = vadd.f32 %v2606_v50, %v2494_v9  ;;  %v2496_v54 = vadd.f32 %v2495_v3, %v5485_v22 }
 0x18a   :  { %v2499_v8 = vpop.f32.mrf.mxu0 }
 0x18b   :  { %v2612_v46 = vpop.f32.mrf.mxu1  ;;  %v5582_v17 = vadd.f32 %v2608_v43, %v2496_v54  ;;  %v2500_v63 = vadd.f32 %v2499_v8, %v5488_v27 }
 0x18c   :  { %v5585_v13 = vpop.f32.mrf.mxu0 }
 0x18d   :  { %v5587_v49 = vpop.f32.mrf.mxu1  ;;  %v5589_v21 = vadd.f32 %v2612_v46, %v2500_v63 }
 0x18e   :  { %v2503_v16 = vpop.f32.mrf.mxu0 }
 0x18f   :  { %v2616_v15 = vpop.f32.mrf.mxu1  ;;  %v2504_v52 = vadd.f32 %v2503_v16, %v5494_v39 }
 0x190   :  { %v5592_v25 = vpop.f32.mrf.mxu0 }
 0x191   :  { %v5594_v19 = vpop.f32.mrf.mxu1  ;;  %v5596_v22 = vadd.f32 %v2616_v15, %v2504_v52 }
 0x192   :  { %v2509_v55 = vpop.f32.mrf.mxu0 }
 0x193   :  { %v2622_v28 = vpop.f32.mrf.mxu1  ;;  %v2510_v27 = vadd.f32 %v2509_v55, %v5500_v53 }
 0x194   :  { %v5599_v24 = vpop.f32.mrf.mxu0 }
 0x195   :  { %v5601_v58 = vpop.f32.mrf.mxu1  ;;  %v5603_v33 = vadd.f32 %v2622_v28, %v2510_v27 }
 0x196   :  { %v2513_v29 = vpop.f32.mrf.mxu0 }
 0x197   :  { %6282 = vst [vmem:[#allocation8_spill] sm:$0xff] %v5603_v33  ;;  %v2626_v61 = vpop.f32.mrf.mxu1  ;;  %v2514_v39 = vadd.f32 %v2513_v29, %v5506_v2 }
 0x198   :  { %v5606_v37 = vpop.f32.mrf.mxu0 }
 0x199   :  { %v5608_v32 = vpop.f32.mrf.mxu1  ;;  %v5610_v1 = vadd.f32 %v2626_v61, %v2514_v39 }
 0x19a   :  { %6283 = vst [vmem:[#allocation9_spill] sm:$0xff] %v5608_v32  ;;  %v2519_v41 = vpop.f32.mrf.mxu0 }
 0x19b   :  { %6284 = vst [vmem:[#allocation10_spill] sm:$0xff] %v5610_v1  ;;  %v2632_v35 = vpop.f32.mrf.mxu1  ;;  %v2520_v53 = vadd.f32 %v2519_v41, %v5512_v18 }
 0x19c   :  { %v5613_v40 = vpop.f32.mrf.mxu0 }
 0x19d   :  { %6285 = vst [vmem:[#allocation11_spill] sm:$0xff] %v5613_v40  ;;  %v5615_v50 = vpop.f32.mrf.mxu1  ;;  %v5617_v9 = vadd.f32 %v2632_v35, %v2520_v53 }
 0x19e   :  { %6286 = vst [vmem:[#allocation12_spill] sm:$0xff] %v5615_v50  ;;  %v2523_v3 = vpop.f32.mrf.mxu0 }
 0x19f   :  { %6287 = vst [vmem:[#allocation13_spill] sm:$0xff] %v5617_v9  ;;  %v2636_v43 = vpop.f32.mrf.mxu1  ;;  %v2524_v2 = vadd.f32 %v2523_v3, %v5518_v30 }
 0x1a0   :  { %v5620_v54 = vpop.f32.mrf.mxu0 }
 0x1a1   :  { %6288 = vst [vmem:[#allocation14_spill] sm:$0xff] %v5620_v54  ;;  %v5622_v8 = vpop.f32.mrf.mxu1  ;;  %v5624_v46 = vadd.f32 %v2636_v43, %v2524_v2 }
 0x1a2   :  { %6289 = vst [vmem:[#allocation15_spill] sm:$0xff] %v5622_v8  ;;  %v2529_v63 = vpop.f32.mrf.mxu0 }
 0x1a3   :  { %6290 = vst [vmem:[#allocation16_spill] sm:$0xff] %v5624_v46  ;;  %v2642_v16 = vpop.f32.mrf.mxu1 }
 0x1a4   :  { %v2531_v15 = vpop.f32.mrf.mxu0 }
 0x1a5   :  { %v2644_v18 = vpop.f32.mrf.mxu1 }
 0x1a6   :  { %v2533_v52 = vpop.f32.mrf.mxu0 }
 0x1a7   :  { %v2646_v55 = vpop.f32.mrf.mxu1 }
 0x1a8   :  { %v2535_v28 = vpop.f32.mrf.mxu0 }
 0x1a9   :  { %v2648_v27 = vpop.f32.mrf.mxu1 }
 0x1aa   :  { %v5626_v29 = vpop.f32.mrf.mxu0 }
 0x1ab   :  { %v5628_v61 = vpop.f32.mrf.mxu1 }
 0x1ac   :  { %v2541_v39 = vpop.f32.mrf.mxu0 }
 0x1ad   :  { %v2654_v30 = vpop.f32.mrf.mxu1 }
 0x1ae   :  { %v5630_v41 = vpop.f32.mrf.mxu0 }
 0x1af   :  { %v5632_v35 = vpop.f32.mrf.mxu1 }
 0x1b0   :  { %v2545_v53 = vpop.f32.mrf.mxu0 }
 0x1b1   :  { %v5634_v3 = vpop.f32.mrf.mxu1 }
 0x1b2   :  { %v5636_v43 = vpop.f32.mrf.mxu0 }
 0x1b3   :  { %v5638_v2 = vpop.f32.mrf.mxu1 }
 0x1b4   :  { %6291 = vst [vmem:[#allocation17_spill] sm:$0xff] %v5638_v2  ;;  %v5640_v46 = vpop.f32.mrf.mxu0 }
 0x1b5   :  { %v5642_v6 = vpop.f32.mrf.mxu1 }
 0x1b6   :  { %v5644_v8 = vpop.f32.mrf.mxu0 }
 0x1b7   :  { %6292 = vst [vmem:[#allocation18_spill] sm:$0xff] %v5644_v8  ;;  %v5646_v9 = vpop.f32.mrf.mxu1  ;;  %v2492_v8 = vadd.f32 %v5572_v5, %v5479_v7  ;;  %v2502_v5 = vadd.f32 %v5585_v13, %v5491_v34 }
 0x1b8   :  { %6293 = vst [vmem:[#allocation19_spill] sm:$0xff] %v5646_v9  ;;  %v5648_v57 = vpop.f32.mrf.mxu0  ;;  %v2532_v9 = vadd.f32 %v2531_v15, %v5527_v48 }
 0x1b9   :  { %v5650_v14 = vpop.f32.mrf.mxu1  ;;  %v2615_v13 = vadd.f32 %v5587_v49, %v2502_v5 }
 0x1ba   :  { %6294 = vst [vmem:[#allocation20_spill] sm:$0xff] %v5650_v14  ;;  %v5652_v54 = vpop.f32.mrf.mxu0 }
 0x1bb   :  { %6295 = vst [vmem:[#allocation21_spill] sm:$0xff] %v5652_v54  ;;  %v5654_v36 = vpop.f32.mrf.mxu1 }
 0x1bc   :  { %6296 = vst [vmem:[#allocation22_spill] sm:$0xff] %v5654_v36  ;;  %v5656_v1 = vpop.f32.mrf.mxu0  ;;  %v2605_v36 = vadd.f32 %v5574_v45, %v2492_v8 }
 0x1bd   :  { %6297 = vst [vmem:[#allocation23_spill] sm:$0xff] %v5656_v1  ;;  %v5658_v50 = vpop.f32.mrf.mxu1  ;;  %v2645_v1 = vadd.f32 %v2644_v18, %v2532_v9 }
 0x1be   :  { %6298 = vst [vmem:[#allocation24_spill] sm:$0xff] %v5658_v50  ;;  %v5660_v44 = vpop.f32.mrf.mxu0  ;;  %v2536_v50 = vadd.f32 %v2535_v28, %v5533_v60 }
 0x1bf   :  { %6299 = vst [vmem:[#allocation25_spill] sm:$0xff] %v5660_v44  ;;  %v5662_v2 = vpop.f32.mrf.mxu1  ;;  %v2530_v44 = vadd.f32 %v2529_v63, %v5524_v42  ;;  %v2542_v42 = vadd.f32 %v2541_v39, %v5539_v11 }
 0x1c0   :  { %6300 = vst [vmem:[#allocation26_spill] sm:$0xff] %v5662_v2  ;;  %v5667_v62 = vpop.f32.mrf.mxu0  ;;  %v2534_v2 = vadd.f32 %v2533_v52, %v5530_v56  ;;  %v2649_v60 = vadd.f32 %v2648_v27, %v2536_v50 }
 0x1c1   :  { %v5669_v14 = vpop.f32.mrf.mxu1  ;;  %v2643_v8 = vadd.f32 %v2642_v16, %v2530_v44  ;;  %v2506_v16 = vadd.f32 %v5592_v25, %v5497_v47  ;;  %v2655_v18 = vadd.f32 %v2654_v30, %v2542_v42 }
 0x1c2   :  { %v2715_v54 = vpop.f32.mrf.mxu0  ;;  %v2647_v63 = vadd.f32 %v2646_v55, %v2534_v2  ;;  %v2540_v55 = vadd.f32 %v5626_v29, %v5536_v4 }
 0x1c3   :  { %v2755_v32 = vpop.f32.mrf.mxu1  ;;  %v5682_v15 = vadd.f32 %v2715_v54, %v5576_v0 }
 0x1c4   :  { %v2717_v33 = vpop.f32.mrf.mxu0  ;;  %v5696_v11 = vadd.f32 %v2755_v32, %v2643_v8  ;;  %v2516_v8 = vadd.f32 %v5606_v37, %v5509_v10 }
 0x1c5   :  { %v2757_v40 = vpop.f32.mrf.mxu1  ;;  %v5675_v7 = vadd.f32 %v2717_v33, %v2605_v36 }
 0x1c6   :  { %v5677_v48 = vadd.f32 %v2757_v40, %v2645_v1  ;;  %v2719_v45 = vpop.f32.mrf.mxu0 }
 0x1c7   :  { %v2759_v9 = vpop.f32.mrf.mxu1  ;;  %v2795_v56 = vsel %vm2794_vm1, %v5675_v7, 0.0  ;;  %v5718_v25 = vadd.f32 %v2719_v45, %v5579_v12  ;;  %v2653_v12 = vadd.f32 %v5628_v61, %v2540_v55 }
 0x1c8   :  { %v2721_v36 = vpop.f32.mrf.mxu0  ;;  %v2796_v1 = vadd.f32 %v2795_v56, %v5682_v15  ;;  %v2827_v0 = vsel %vm2794_vm1, %v5677_v48, 0.0  ;;  %v5698_v50 = vadd.f32 %v2759_v9, %v2647_v63  ;;  %v2552_v9 = vadd.f32 %v5640_v46, %v5551_v38 }
 0x1c9   :  { %v2761_v33 = vpop.f32.mrf.mxu1  ;;  %v5689_v40 = vadd.f32 %v2721_v36, %v5582_v17  ;;  %v2546_v17 = vadd.f32 %v2545_v53, %v5545_v26  ;;  %v2828_v27 = vadd.f32 %v2827_v0, %v5696_v11  ;;  %v2512_v26 = vadd.f32 %v5599_v24, %v5503_v59 }
 0x1ca   :  { %v5691_v34 = vadd.f32 %v2761_v33, %v2649_v60  ;;  %v2725_v44 = vpop.f32.mrf.mxu0  ;;  %2797 = vadd.xlane.f32.xlu0 %v2796_v1  ;;  %v2619_v53 = vadd.f32 %v5594_v19, %v2506_v16  ;;  %v2665_v63 = vadd.f32 %v5642_v6, %v2552_v9  ;;  %v2556_v36 = vadd.f32 %v5648_v57, %v5557_v51  ;;  %v6301_v57 = vld [vmem:[#allocation11_spill] sm:$0xff] }
 0x1cb   :  { %v2765_v54 = vpop.f32.mrf.mxu1  ;;  %v2799_v47 = vsel %vm2794_vm1, %v5689_v40, 0.0  ;;  %v5721_v4 = vadd.f32 %v2725_v44, %v5589_v21  ;;  %v2659_v5 = vadd.f32 %v5634_v3, %v2546_v17  ;;  %v2544_v21 = vadd.f32 %v5630_v41, %v5542_v20 }
 0x1cc   :  { %v2831_v52 = vsel %vm2794_vm1, %v5691_v34, 0.0  ;;  %v2727_v49 = vpop.f32.mrf.mxu0  ;;  %v2800_v42 = vadd.f32 %v2799_v47, %v5718_v25  ;;  %v2625_v46 = vadd.f32 %v5601_v58, %v2512_v26  ;;  %v5741_v56 = vadd.f32 %v2765_v54, %v2653_v12  ;;  %v6302_v54 = vld [vmem:[#allocation8_spill] sm:$0xff]  ;;  %v6308_v26 = vld [vmem:[#allocation3_spill] sm:$0xff] }
 0x1cd   :  { %v2767_v32 = vpop.f32.mrf.mxu1  ;;  %v2832_v28 = vadd.f32 %v2831_v52, %v5698_v50  ;;  %v5709_v39 = vadd.f32 %v2727_v49, %v2615_v13  ;;  %v2657_v33 = vadd.f32 %v5632_v35, %v2544_v21  ;;  %v2522_v37 = vadd.f32 %v6301_v57, %v5515_v23  ;;  %v6304_v52 = vld [vmem:[#allocation20_spill] sm:$0xff]  ;;  %v6305_v49 = vld [vmem:[#allocation5_spill] sm:$0xff] }
 0x1ce   :  { %v5711_v2 = vadd.f32 %v2767_v32, %v2655_v18  ;;  %v2729_v29 = vpop.f32.mrf.mxu0  ;;  %2829 = vadd.xlane.f32.xlu0 %v2828_v27  ;;  %v6303_v18 = vld [vmem:[#allocation9_spill] sm:$0xff]  ;;  %v2669_v55 = vadd.f32 %v6304_v52, %v2556_v36  ;;  %v6306_v32 = vld [vmem:[#allocation23_spill] sm:$0xff]  ;;  %v6313_v36 = vld [vmem:[#allocation14_spill] sm:$0xff] }
 0x1cf   :  { %v2769_v30 = vpop.f32.mrf.mxu1  ;;  %2833 = vadd.xlane.f32.xlu1 %v2832_v28  ;;  %v2803_v59 = vsel %vm2794_vm1, %v5709_v39, 0.0  ;;  %v5744_v61 = vadd.f32 %v2729_v29, %v5596_v22  ;;  %v2550_v22 = vadd.f32 %v5636_v43, %v5548_v31  ;;  %v2629_v17 = vadd.f32 %v6303_v18, %v2516_v8  ;;  %v6307_v23 = vld [vmem:[#allocation17_spill] sm:$0xff]  ;;  %v6309_v29 = vld [vmem:[#allocation18_spill] sm:$0xff] }
 0x1d0   :  { %v2731_v24 = vpop.f32.mrf.mxu0  ;;  %v2804_v60 = vadd.f32 %v2803_v59, %v5721_v4  ;;  %v2835_v38 = vsel %vm2794_vm1, %v5711_v2, 0.0  ;;  %v5766_v35 = vadd.f32 %v2769_v30, %v2657_v33  ;;  %v2562_v28 = vadd.f32 %v6306_v32, %v6305_v49  ;;  %v6314_v33 = vld [vmem:[#allocation24_spill] sm:$0xff]  ;;  %v6318_v57 = vld [vmem:[#allocation21_spill] sm:$0xff] }
 0x1d1   :  { %v2771_v45 = vpop.f32.mrf.mxu1  ;;  %v5734_v19 = vadd.f32 %v2731_v24, %v2619_v53  ;;  %v2836_v44 = vadd.f32 %v2835_v38, %v5741_v56  ;;  %v2663_v47 = vadd.f32 %v6307_v23, %v2550_v22  ;;  %v2554_v30 = vadd.f32 %v6309_v29, %v6308_v26  ;;  %v6311_v38 = vld [vmem:[#allocation10_spill] sm:$0xff]  ;;  %v6319_v32 = vld [vmem:[#allocation13_spill] sm:$0xff] }
 0x1d2   :  { %v5736_v3 = vadd.f32 %v2771_v45, %v2659_v5  ;;  %v2735_v20 = vpop.f32.mrf.mxu0  ;;  %2801 = vadd.xlane.f32.xlu0 %v2800_v42  ;;  %v6310_v45 = vld [vmem:[#allocation12_spill] sm:$0xff]  ;;  %v2675_v22 = vadd.f32 %v6314_v33, %v2562_v28 }
 0x1d3   :  { %v2775_v41 = vpop.f32.mrf.mxu1  ;;  %2805 = vadd.xlane.f32.xlu1 %v2804_v60  ;;  %v2807_v58 = vsel %vm2794_vm1, %v5734_v19, 0.0  ;;  %v5769_v31 = vadd.f32 %v2735_v20, %v6302_v54  ;;  %v2635_v60 = vadd.f32 %v6310_v45, %v2522_v37 }
 0x1d4   :  { %v2737_v1 = vpop.f32.mrf.mxu0  ;;  %v2808_v13 = vadd.f32 %v2807_v58, %v5744_v61  ;;  %v2839_v51 = vsel %vm2794_vm1, %v5736_v3, 0.0  ;;  %v5789_v42 = vadd.f32 %v2775_v41, %v2663_v47  ;;  %v6316_v41 = vld [vmem:[#allocation19_spill] sm:$0xff] }
 0x1d5   :  { %v2777_v0 = vpop.f32.mrf.mxu1  ;;  %v5758_v10 = vadd.f32 %v2737_v1, %v2625_v46  ;;  %v2840_v9 = vadd.f32 %v2839_v51, %v5766_v35  ;;  %v6315_v1 = vld [vmem:[#allocation7_spill] sm:$0xff]  ;;  %v6317_v51 = vld [vmem:[#allocation4_spill] sm:$0xff] }
 0x1d6   :  { %v5760_v6 = vadd.f32 %v2777_v0, %v2665_v63  ;;  %v2739_v43 = vpop.f32.mrf.mxu0  ;;  %2837 = vadd.xlane.f32.xlu0 %v2836_v44  ;;  %v6312_v63 = vld [vmem:[#allocation2_spill] sm:$0xff]  ;;  %v2566_v0 = vadd.f32 %v5667_v62, %v6315_v1  ;;  %v2667_v44 = vadd.f32 %v6316_v41, %v2554_v30  ;;  %v2560_v37 = vadd.f32 %v6318_v57, %v6317_v51  ;;  %v6320_v47 = vld [vmem:[#allocation15_spill] sm:$0xff] }
 0x1d7   :  { %v2779_v16 = vpop.f32.mrf.mxu1  ;;  %2809 = vadd.xlane.f32.xlu1 %v2808_v13  ;;  %v2811_v27 = vsel %vm2794_vm1, %v5758_v10, 0.0  ;;  %v5792_v46 = vadd.f32 %v2739_v43, %v6311_v38  ;;  %v2526_v58 = vadd.f32 %v6313_v36, %v6312_v63  ;;  %v6325_v1 = vld [vmem:[#allocation26_spill] sm:$0xff]  ;;  %v4393_v57 = vmov 0  }
 0x1d8   :  { %v2741_v53 = vpop.f32.mrf.mxu0  ;;  %v2812_v59 = vadd.f32 %v2811_v27, %v5769_v31  ;;  %v2843_v24 = vsel %vm2794_vm1, %v5760_v6, 0.0  ;;  %v5812_v49 = vadd.f32 %v2779_v16, %v2667_v44  ;;  %v2679_v29 = vadd.f32 %v5669_v14, %v2566_v0  ;;  %3867 = vset.pattern.permute.xlu1 %v4393_v57  ;;  %3868 = vset.pattern.permute.xlu0 %v4393_v57 }
 0x1d9   :  { %v2781_v5 = vpop.f32.mrf.mxu1  ;;  %v5782_v12 = vadd.f32 %v2741_v53, %v2629_v17  ;;  %v2844_v17 = vadd.f32 %v2843_v24, %v5789_v42  ;;  %v2639_v26 = vadd.f32 %v6320_v47, %v2526_v58  ;;  %v6321_v53 = vld [vmem:[#allocation22_spill] sm:$0xff]  ;;  %v6324_v58 = vld [vmem:[#allocation16_spill] sm:$0xff] }
 0x1da   :  { %v5784_v21 = vadd.f32 %v2781_v5, %v2669_v55  ;;  %v2745_v20 = vpop.f32.mrf.mxu0  ;;  %2813 = vadd.xlane.f32.xlu0 %v2812_v59  ;;  %v2673_v5 = vadd.f32 %v6321_v53, %v2560_v37  ;;  %v6323_v59 = vld [vmem:[#allocation25_spill] sm:$0xff] }
 0x1db   :  { %v2785_v8 = vpop.f32.mrf.mxu1  ;;  %2841 = vadd.xlane.f32.xlu1 %v2840_v9  ;;  %v2815_v13 = vsel %vm2794_vm1, %v5782_v12, 0.0  ;;  %v5815_v28 = vadd.f32 %v2745_v20, %v6319_v32  ;;  %v6322_v9 = vld [vmem:[#allocation6_spill] sm:$0xff] }
 0x1dc   :  { %v2747_v54 = vpop.f32.mrf.mxu0  ;;  %v2816_v18 = vadd.f32 %v2815_v13, %v5792_v46  ;;  %v2847_v62 = vsel %vm2794_vm1, %v5784_v21, 0.0  ;;  %v2564_v16 = vadd.f32 %v6323_v59, %v6322_v9  ;;  %v5832_v36 = vadd.f32 %v2785_v8, %v2673_v5 }
 0x1dd   :  { %v2787_v43 = vpop.f32.mrf.mxu1  ;;  %v5806_v52 = vadd.f32 %v2747_v54, %v2635_v60  ;;  %v2848_v60 = vadd.f32 %v2847_v62, %v5812_v49 }
 0x1de   :  { %v5808_v55 = vadd.f32 %v2787_v43, %v2675_v22  ;;  %v2749_v27 = vpop.f32.mrf.mxu0  ;;  %2845 = vadd.xlane.f32.xlu0 %v2844_v17  ;;  %v2677_v0 = vadd.f32 %v6325_v1, %v2564_v16 }
 0x1df   :  { %v2789_v23 = vpop.f32.mrf.mxu1  ;;  %2817 = vadd.xlane.f32.xlu1 %v2816_v18  ;;  %v2819_v30 = vsel %vm2794_vm1, %v5806_v52, 0.0  ;;  %v5835_v33 = vadd.f32 %v2749_v27, %v6324_v58 }
 0x1e0   :  { %v2751_v24 = vpop.f32.mrf.mxu0  ;;  %v2820_v38 = vadd.f32 %v2819_v30, %v5815_v28  ;;  %v2851_v14 = vsel %vm2794_vm1, %v5808_v55, 0.0  ;;  %v5844_v51 = vadd.f32 %v2789_v23, %v2677_v0 }
 0x1e1   :  { %v2791_v45 = vpop.f32.mrf.mxu1  ;;  %v5826_v20 = vadd.f32 %v2751_v24, %v2639_v26  ;;  %v2852_v41 = vadd.f32 %v2851_v14, %v5832_v36 }
 0x1e2   :  { %v5828_v63 = vadd.f32 %v2791_v45, %v2679_v29  ;;  %2821 = vadd.xlane.f32.xlu0 %v2820_v38 }
 0x1e3   :  { %2849 = vadd.xlane.f32.xlu1 %v2848_v60  ;;  %v2823_v22 = vsel %vm2794_vm1, %v5826_v20, 0.0 }
 0x1e4   :  { %v2824_v13 = vadd.f32 %v2823_v22, %v5835_v33  ;;  %v2855_v44 = vsel %vm2794_vm1, %v5828_v63, 0.0 }
 0x1e5   :  { %v2856_v8 = vadd.f32 %v2855_v44, %v5844_v51 }
 0x1e6   :  { %2853 = vadd.xlane.f32.xlu0 %v2852_v41 }
 0x1e7   :  { %2825 = vadd.xlane.f32.xlu1 %v2824_v13 }
 0x1eb   :  { %2857 = vadd.xlane.f32.xlu1 %v2856_v8 }
 0x253   :  { %v2798_v37 = vpop.xlane.xlu0 %2797 }
 0x254   :  { %v2859_v54 = vmul.f32 0.0051020407, %v2798_v37 }
 0x256   :  { %v5848_v43 = vsub.f32 %v5682_v15, %v2859_v54  ;;  %v5851_v18 = vsub.f32 %v5675_v7, %v2859_v54 }
 0x257   :  { %v2830_v62 = vpop.xlane.xlu0 %2829 }
 0x258   :  { %v2834_v17 = vpop.xlane.xlu1 %2833  ;;  %v2867_v32 = vmul.f32 0.0051020407, %v2830_v62  ;;  %v2907_v27 = vmul.f32 %v5848_v43, %v5848_v43  ;;  %v2908_v23 = vmul.f32 %v5851_v18, %v5851_v18 }
 0x259   :  { %v2868_v47 = vmul.f32 0.0051020407, %v2834_v17 }
 0x25a   :  { %v5858_v26 = vsub.f32 %v5696_v11, %v2867_v32  ;;  %v5861_v29 = vsub.f32 %v5677_v48, %v2867_v32  ;;  %v2939_v7 = vsel %vm2794_vm1, %v2908_v23, 0.0 }
 0x25b   :  { %v2802_v30 = vpop.xlane.xlu0 %2801  ;;  %v2940_v9 = vadd.f32 %v2939_v7, %v2907_v27  ;;  %v5867_v16 = vsub.f32 %v5691_v34, %v2868_v47 }
 0x25c   :  { %v2806_v15 = vpop.xlane.xlu1 %2805  ;;  %v2860_v5 = vmul.f32 0.0051020407, %v2802_v30  ;;  %v2923_v59 = vmul.f32 %v5858_v26, %v5858_v26  ;;  %v2924_v11 = vmul.f32 %v5861_v29, %v5861_v29 }
 0x25d   :  { %v2861_v53 = vmul.f32 0.0051020407, %v2806_v15  ;;  %2941 = vadd.xlane.f32.xlu0 %v2940_v9 }
 0x25e   :  { %v5878_v45 = vsub.f32 %v5718_v25, %v2860_v5  ;;  %v5881_v60 = vsub.f32 %v5689_v40, %v2860_v5  ;;  %v2971_v34 = vsel %vm2794_vm1, %v2924_v11, 0.0 }
 0x25f   :  { %v5872_v24 = vsub.f32 %v5721_v4, %v2861_v53  ;;  %v5875_v48 = vsub.f32 %v5709_v39, %v2861_v53  ;;  %v2838_v14 = vpop.xlane.xlu0 %2837  ;;  %v2972_v1 = vadd.f32 %v2971_v34, %v2923_v59  ;;  %v5887_v39 = vsub.f32 %v5698_v50, %v2868_v47 }
 0x260   :  { %v2810_v38 = vpop.xlane.xlu1 %2809  ;;  %v2869_v22 = vmul.f32 0.0051020407, %v2838_v14  ;;  %v2909_v40 = vmul.f32 %v5878_v45, %v5878_v45  ;;  %v2910_v0 = vmul.f32 %v5881_v60, %v5881_v60  ;;  %v2926_v50 = vmul.f32 %v5867_v16, %v5867_v16 }
 0x261   :  { %v2862_v58 = vmul.f32 0.0051020407, %v2810_v38  ;;  %v2911_v4 = vmul.f32 %v5872_v24, %v5872_v24  ;;  %v2912_v25 = vmul.f32 %v5875_v48, %v5875_v48  ;;  %2973 = vadd.xlane.f32.xlu0 %v2972_v1 }
 0x262   :  { %v5899_v41 = vsub.f32 %v5741_v56, %v2869_v22  ;;  %v5902_v44 = vsub.f32 %v5711_v2, %v2869_v22  ;;  %v2975_v7 = vsel %vm2794_vm1, %v2926_v50, 0.0 }
 0x263   :  { %v5896_v13 = vsub.f32 %v5734_v19, %v2862_v58  ;;  %v5907_v8 = vsub.f32 %v5744_v61, %v2862_v58  ;;  %v2814_v37 = vpop.xlane.xlu0 %2813  ;;  %v2947_v54 = vsel %vm2794_vm1, %v2912_v25, 0.0  ;;  %v2943_v19 = vsel %vm2794_vm1, %v2910_v0, 0.0 }
 0x264   :  { %v2842_v57 = vpop.xlane.xlu1 %2841  ;;  %v2863_v62 = vmul.f32 0.0051020407, %v2814_v37  ;;  %v2948_v56 = vadd.f32 %v2947_v54, %v2911_v4  ;;  %v2944_v32 = vadd.f32 %v2943_v19, %v2909_v40  ;;  %v2927_v2 = vmul.f32 %v5899_v41, %v5899_v41 }
 0x265   :  { %v2870_v17 = vmul.f32 0.0051020407, %v2842_v57  ;;  %v2928_v27 = vmul.f32 %v5902_v44, %v5902_v44  ;;  %v2925_v61 = vmul.f32 %v5887_v39, %v5887_v39  ;;  %v2914_v23 = vmul.f32 %v5896_v13, %v5896_v13 }
 0x266   :  { %v5923_v15 = vsub.f32 %v5769_v31, %v2863_v62  ;;  %v5926_v30 = vsub.f32 %v5758_v10, %v2863_v62  ;;  %2949 = vadd.xlane.f32.xlu0 %v2948_v56  ;;  %2945 = vadd.xlane.f32.xlu1 %v2944_v32  ;;  %v2913_v59 = vmul.f32 %v5907_v8, %v5907_v8 }
 0x267   :  { %v5920_v47 = vsub.f32 %v5736_v3, %v2870_v17  ;;  %v2846_v5 = vpop.xlane.xlu0 %2845  ;;  %v2979_v9 = vsel %vm2794_vm1, %v2928_v27, 0.0  ;;  %v2951_v3 = vsel %vm2794_vm1, %v2914_v23, 0.0  ;;  %v5936_v14 = vsub.f32 %v5766_v35, %v2870_v17 }
 0x268   :  { %v2818_v53 = vpop.xlane.xlu1 %2817  ;;  %v2871_v38 = vmul.f32 0.0051020407, %v2846_v5  ;;  %v2980_v31 = vadd.f32 %v2979_v9, %v2927_v2  ;;  %v2915_v10 = vmul.f32 %v5923_v15, %v5923_v15  ;;  %v2976_v34 = vadd.f32 %v2975_v7, %v2925_v61 }
 0x269   :  { %v2864_v11 = vmul.f32 0.0051020407, %v2818_v53  ;;  %v2916_v58 = vmul.f32 %v5926_v30, %v5926_v30  ;;  %v2930_v22 = vmul.f32 %v5920_v47, %v5920_v47  ;;  %v2952_v50 = vadd.f32 %v2951_v3, %v2913_v59 }
 0x26a   :  { %v5946_v4 = vsub.f32 %v5789_v42, %v2871_v38  ;;  %v5949_v25 = vsub.f32 %v5760_v6, %v2871_v38  ;;  %2981 = vadd.xlane.f32.xlu0 %v2980_v31  ;;  %2977 = vadd.xlane.f32.xlu1 %v2976_v34  ;;  %v2929_v42 = vmul.f32 %v5936_v14, %v5936_v14 }
 0x26b   :  { %v5943_v1 = vsub.f32 %v5782_v12, %v2864_v11  ;;  %v2822_v40 = vpop.xlane.xlu0 %2821  ;;  %v2955_v0 = vsel %vm2794_vm1, %v2916_v58, 0.0  ;;  %v5955_v19 = vsub.f32 %v5792_v46, %v2864_v11  ;;  %v2983_v17 = vsel %vm2794_vm1, %v2930_v22, 0.0 }
 0x26c   :  { %v2850_v35 = vpop.xlane.xlu1 %2849  ;;  %v2865_v37 = vmul.f32 0.0051020407, %v2822_v40  ;;  %v2956_v54 = vadd.f32 %v2955_v0, %v2915_v10  ;;  %v2931_v12 = vmul.f32 %v5946_v4, %v5946_v4  ;;  %v2932_v6 = vmul.f32 %v5949_v25, %v5949_v25  ;;  %v3197_v40 = vld [vmem:[%s6273_s3 + $0x10] sm:$0xff]  ;;  %v3196_v0 = vld [vmem:[%s6273_s3 + $0x8] sm:$0xff] }
 0x26d   :  { %v2872_v57 = vmul.f32 0.0051020407, %v2850_v35  ;;  %v2918_v46 = vmul.f32 %v5943_v1, %v5943_v1  ;;  %v2917_v53 = vmul.f32 %v5955_v19, %v5955_v19  ;;  %v3195_v35 = vld [vmem:[%s6273_s3] sm:$0xff] }
 0x26e   :  { %v5966_v56 = vsub.f32 %v5815_v28, %v2865_v37  ;;  %v5969_v32 = vsub.f32 %v5806_v52, %v2865_v37  ;;  %2957 = vadd.xlane.f32.xlu0 %v2956_v54  ;;  %2953 = vadd.xlane.f32.xlu1 %v2952_v50  ;;  %v2987_v27 = vsel %vm2794_vm1, %v2932_v6, 0.0  ;;  %v2984_v28 = vadd.f32 %v2983_v17, %v2929_v42  ;;  %v3199_v50 = vld [vmem:[%s6273_s3 + $0x20] sm:$0xff]  ;;  %v3201_v37 = vld [vmem:[%s6273_s3 + $0x30] sm:$0xff]  ;;  %v3200_v54 = vld [vmem:[%s6273_s3 + $0x28] sm:$0xff] }
 0x26f   :  { %v5963_v62 = vsub.f32 %v5784_v21, %v2872_v57  ;;  %v2854_v2 = vpop.xlane.xlu0 %2853  ;;  %v2988_v23 = vadd.f32 %v2987_v27, %v2931_v12  ;;  %v5977_v7 = vsub.f32 %v5812_v49, %v2872_v57  ;;  %v2959_v59 = vsel %vm2794_vm1, %v2918_v46, 0.0  ;;  %v3198_v57 = vld [vmem:[%s6273_s3 + $0x18] sm:$0xff]  ;;  %v3204_v6 = vld [vmem:[%s6273_s3 + $0x48] sm:$0xff] }
 0x270   :  { %v2873_v61 = vmul.f32 0.0051020407, %v2854_v2  ;;  %v2919_v21 = vmul.f32 %v5966_v56, %v5966_v56  ;;  %v2920_v52 = vmul.f32 %v5969_v32, %v5969_v32  ;;  %v2960_v31 = vadd.f32 %v2959_v59, %v2917_v53  ;;  %v3202_v12 = vld [vmem:[%s6273_s3 + $0x38] sm:$0xff]  ;;  %v3208_v17 = vld [vmem:[%s6273_s3 + $0x68] sm:$0xff]  ;;  %v2826_v46 = vpop.xlane.xlu1 %2825 }
 0x271   :  { %v2934_v49 = vmul.f32 %v5963_v62, %v5963_v62  ;;  %v3206_v42 = vld [vmem:[%s6273_s3 + $0x58] sm:$0xff]  ;;  %v2866_v2 = vmul.f32 0.0051020407, %v2826_v46 }
 0x272   :  { %v5984_v5 = vsub.f32 %v5832_v36, %v2873_v61  ;;  %v5987_v9 = vsub.f32 %v5808_v55, %v2873_v61  ;;  %2989 = vadd.xlane.f32.xlu0 %v2988_v23  ;;  %2985 = vadd.xlane.f32.xlu1 %v2984_v28  ;;  %v2963_v3 = vsel %vm2794_vm1, %v2920_v52, 0.0  ;;  %v2933_v55 = vmul.f32 %v5977_v7, %v5977_v7 }
 0x273   :  { %v2964_v11 = vadd.f32 %v2963_v3, %v2919_v21  ;;  %v2991_v34 = vsel %vm2794_vm1, %v2934_v49, 0.0  ;;  %v6035_v61 = vsub.f32 %v5826_v20, %v2866_v2  ;;  %v6038_v21 = vsub.f32 %v5835_v33, %v2866_v2 }
 0x274   :  { %v2935_v38 = vmul.f32 %v5984_v5, %v5984_v5  ;;  %v2936_v36 = vmul.f32 %v5987_v9, %v5987_v9  ;;  %v2992_v22 = vadd.f32 %v2991_v34, %v2933_v55  ;;  %v2858_v27 = vpop.xlane.xlu1 %2857 }
 0x275   :  { %v2874_v23 = vmul.f32 0.0051020407, %v2858_v27  ;;  %v2922_v52 = vmul.f32 %v6035_v61, %v6035_v61  ;;  %v2921_v59 = vmul.f32 %v6038_v21, %v6038_v21  ;;  %v3051_v27 = vld [vmem:[%s6274_s2] sm:$0xff] }
 0x276   :  { %2965 = vadd.xlane.f32.xlu0 %v2964_v11  ;;  %v2995_v10 = vsel %vm2794_vm1, %v2936_v36, 0.0  ;;  %2961 = vadd.xlane.f32.xlu1 %v2960_v31  ;;  %v3207_v36 = vld [vmem:[%s6273_s3 + $0x60] sm:$0xff] }
 0x277   :  { %v2996_v58 = vadd.f32 %v2995_v10, %v2935_v38  ;;  %v6041_v28 = vsub.f32 %v5828_v63, %v2874_v23  ;;  %v6046_v53 = vsub.f32 %v5844_v51, %v2874_v23  ;;  %v2967_v49 = vsel %vm2794_vm1, %v2922_v52, 0.0  ;;  %v3203_v51 = vld [vmem:[%s6273_s3 + $0x40] sm:$0xff]  ;;  %v3205_v38 = vld [vmem:[%s6273_s3 + $0x50] sm:$0xff] }
 0x278   :  { %v2968_v3 = vadd.f32 %v2967_v49, %v2921_v59 }
 0x279   :  { %v2938_v20 = vmul.f32 %v6041_v28, %v6041_v28  ;;  %v2937_v33 = vmul.f32 %v6046_v53, %v6046_v53 }
 0x27a   :  { %2997 = vadd.xlane.f32.xlu0 %v2996_v58  ;;  %2993 = vadd.xlane.f32.xlu1 %v2992_v22 }
 0x27b   :  { %v2999_v63 = vsel %vm2794_vm1, %v2938_v20, 0.0 }
 0x27c   :  { %v3000_v11 = vadd.f32 %v2999_v63, %v2937_v33  ;;  %v3059_v63 = vld [vmem:[%s6274_s2 + $0x40] sm:$0xff] }
 0x28b   :  { %3213 = vperm.xlu1 %3867, %v3195_v35  }
 0x28f   :  { %3223 = vperm.xlu1 %3867, %v3197_v40  }
 0x290   :  { %3218 = vperm.xlu0 %3868, %v3196_v0  }
 0x293   :  { %3233 = vperm.xlu1 %3867, %v3199_v50  }
 0x294   :  { %3228 = vperm.xlu0 %3868, %v3198_v57  }
 0x297   :  { %3243 = vperm.xlu1 %3867, %v3201_v37  }
 0x298   :  { %3238 = vperm.xlu0 %3868, %v3200_v54  }
 0x29c   :  { %3248 = vperm.xlu0 %3868, %v3202_v12  }
 0x2a0   :  { %3258 = vperm.xlu0 %3868, %v3204_v6  }
 0x2a4   :  { %3268 = vperm.xlu0 %3868, %v3206_v42  }
 0x2a8   :  { %3278 = vperm.xlu0 %3868, %v3208_v17  }
 0x2bb   :  { %2969 = vadd.xlane.f32.xlu1 %v2968_v3 }
 0x2bf   :  { %3001 = vadd.xlane.f32.xlu1 %v3000_v11 }
 0x2d0   :  { %3253 = vperm.xlu1 %3867, %v3203_v51  }
 0x2d4   :  { %3263 = vperm.xlu1 %3867, %v3205_v38  }
 0x2d8   :  { %3273 = vperm.xlu1 %3867, %v3207_v36  }
 0x2e6   :  { %v2942_v31 = vpop.xlane.xlu0 %2941 }
 0x2e7   :  { %v3003_v55 = vmul.f32 0.0051020407, %v2942_v31 }
 0x2e9   :  { %v3019_v10 = vadd.f32 1e-05, %v3003_v55 }
 0x2ea   :  { %v2974_v34 = vpop.xlane.xlu0 %2973 }
 0x2eb   :  { %4361 = vrsqrt.f32 %v3019_v10  ;;  %v3011_v58 = vmul.f32 0.0051020407, %v2974_v34 }
 0x2ed   :  { %v3027_v22 = vadd.f32 1e-05, %v3011_v58  ;;  %v3052_v58 = vld [vmem:[%s6274_s2 + $0x8] sm:$0xff] }
 0x2ef   :  { %v2950_v35 = vpop.xlane.xlu0 %2949  ;;  %4363 = vrsqrt.f32 %v3027_v22  ;;  %v2946_v0 = vpop.xlane.xlu1 %2945 }
 0x2f0   :  { %v3005_v40 = vmul.f32 0.0051020407, %v2950_v35  ;;  %v3004_v50 = vmul.f32 0.0051020407, %v2946_v0 }
 0x2f2   :  { %v3021_v57 = vadd.f32 1e-05, %v3005_v40  ;;  %v3020_v37 = vadd.f32 1e-05, %v3004_v50 }
 0x2f3   :  { %v2982_v54 = vpop.xlane.xlu0 %2981  ;;  %v2978_v6 = vpop.xlane.xlu1 %2977 }
 0x2f4   :  { %v3013_v12 = vmul.f32 0.0051020407, %v2982_v54  ;;  %4365 = vrsqrt.f32 %v3020_v37  ;;  %v3012_v42 = vmul.f32 0.0051020407, %v2978_v6  ;;  %v3053_v54 = vld [vmem:[%s6274_s2 + $0x10] sm:$0xff] }
 0x2f5   :  { %4367 = vrsqrt.f32 %v3021_v57 }
 0x2f6   :  { %v3029_v17 = vadd.f32 1e-05, %v3013_v12  ;;  %v3028_v46 = vadd.f32 1e-05, %v3012_v42  ;;  %v3060_v12 = vld [vmem:[%s6274_s2 + $0x48] sm:$0xff] }
 0x2f7   :  { %v2958_v2 = vpop.xlane.xlu0 %2957  ;;  %v2954_v23 = vpop.xlane.xlu1 %2953 }
 0x2f8   :  { %v4362_v52 = vpop.eup %4361  ;;  %4369 = vrsqrt.f32 %v3028_v46  ;;  %v3006_v59 = vmul.f32 0.0051020407, %v2954_v23  ;;  %v3007_v20 = vmul.f32 0.0051020407, %v2958_v2 }
 0x2f9   :  { %v3067_v49 = vmul.f32 %v4362_v52, %v3051_v27  ;;  %4371 = vrsqrt.f32 %v3029_v17 }
 0x2fa   :  { %v3022_v3 = vadd.f32 1e-05, %v3006_v59  ;;  %v3023_v55 = vadd.f32 1e-05, %v3007_v20 }
 0x2fb   :  { %v2990_v33 = vpop.xlane.xlu0 %2989  ;;  %v2986_v11 = vpop.xlane.xlu1 %2985  ;;  %3085 = vperm.xlu0 %3868, %v3067_v49   ;;  %v3061_v49 = vld [vmem:[%s6274_s2 + $0x50] sm:$0xff] }
 0x2fc   :  { %v4364_v51 = vpop.eup %4363  ;;  %v3014_v38 = vmul.f32 0.0051020407, %v2986_v11  ;;  %v3015_v36 = vmul.f32 0.0051020407, %v2990_v33  ;;  %4373 = vrsqrt.f32 %v3022_v3  ;;  %v3054_v11 = vld [vmem:[%s6274_s2 + $0x18] sm:$0xff] }
 0x2fd   :  { %v3075_v31 = vmul.f32 %v4364_v51, %v3059_v63  ;;  %v3062_v51 = vld [vmem:[%s6274_s2 + $0x58] sm:$0xff] }
 0x2fe   :  { %v3030_v10 = vadd.f32 1e-05, %v3014_v38  ;;  %v3031_v35 = vadd.f32 1e-05, %v3015_v36 }
 0x2ff   :  { %v2962_v34 = vpop.xlane.xlu1 %2961  ;;  %3125 = vperm.xlu1 %3867, %v3075_v31   ;;  %v2966_v40 = vpop.xlane.xlu0 %2965 }
 0x300   :  { %4375 = vrsqrt.f32 %v3030_v10  ;;  %v3008_v0 = vmul.f32 0.0051020407, %v2962_v34  ;;  %v3009_v17 = vmul.f32 0.0051020407, %v2966_v40  ;;  %v3055_v34 = vld [vmem:[%s6274_s2 + $0x20] sm:$0xff]  ;;  %v3064_v40 = vld [vmem:[%s6274_s2 + $0x68] sm:$0xff] }
 0x301   :  { %v4366_v22 = vpop.eup %4365  ;;  %4377 = vrsqrt.f32 %v3023_v55 }
 0x302   :  { %v3068_v50 = vmul.f32 %v4366_v22, %v3052_v58  ;;  %v4368_v57 = vpop.eup %4367  ;;  %4379 = vrsqrt.f32 %v3031_v35  ;;  %v3024_v46 = vadd.f32 1e-05, %v3008_v0  ;;  %v3025_v20 = vadd.f32 1e-05, %v3009_v17  ;;  %v3063_v35 = vld [vmem:[%s6274_s2 + $0x60] sm:$0xff] }
 0x303   :  { %v2994_v37 = vpop.xlane.xlu1 %2993  ;;  %v3069_v27 = vmul.f32 %v4368_v57, %v3053_v54  ;;  %v2998_v59 = vpop.xlane.xlu0 %2997  ;;  %v3056_v54 = vld [vmem:[%s6274_s2 + $0x28] sm:$0xff] }
 0x304   :  { %v3016_v6 = vmul.f32 0.0051020407, %v2994_v37  ;;  %3090 = vperm.xlu1 %3867, %v3068_v50   ;;  %v3017_v3 = vmul.f32 0.0051020407, %v2998_v59 }
 0x305   :  { %v4370_v42 = vpop.eup %4369 }
 0x306   :  { %v3032_v2 = vadd.f32 1e-05, %v3016_v6  ;;  %v3076_v23 = vmul.f32 %v4370_v42, %v3060_v12  ;;  %v4372_v52 = vpop.eup %4371  ;;  %v3033_v36 = vadd.f32 1e-05, %v3017_v3  ;;  %v3057_v42 = vld [vmem:[%s6274_s2 + $0x30] sm:$0xff] }
 0x307   :  { %v3077_v33 = vmul.f32 %v4372_v52, %v3061_v49 }
 0x308   :  { %4381 = vrsqrt.f32 %v3032_v2  ;;  %3095 = vperm.xlu1 %3867, %v3069_v27   ;;  %3130 = vperm.xlu0 %3868, %v3076_v23   ;;  %v3065_v2 = vld [vmem:[%s6274_s2 + $0x70] sm:$0xff]  ;;  %v3214_v23 = vpop.permute.xlu1 %3213 }
 0x309   :  { %4383 = vrsqrt.f32 %v3024_v46  ;;  %v4374_v63 = vpop.eup %4373 }
 0x30a   :  { %4385 = vrsqrt.f32 %v3025_v20  ;;  %v3070_v31 = vmul.f32 %v4374_v63, %v3054_v11 }
 0x30b   :  { %4387 = vrsqrt.f32 %v3033_v36 }
 0x30c   :  { %3135 = vperm.xlu1 %3867, %v3077_v33   ;;  %v6107_v52 = vpop.permute.xlu1 %3223 }
 0x30d   :  { %v4376_v38 = vpop.eup %4375 }
 0x30e   :  { %v3078_v55 = vmul.f32 %v4376_v38, %v3062_v51  ;;  %v4378_v10 = vpop.eup %4377  ;;  %v3219_v38 = vpop.permute.xlu0 %3218 }
 0x30f   :  { %v4380_v58 = vpop.eup %4379  ;;  %v3071_v22 = vmul.f32 %v4378_v10, %v3055_v34  ;;  %v3066_v34 = vld [vmem:[%s6274_s2 + $0x78] sm:$0xff] }
 0x310   :  { %3100 = vperm.xlu1 %3867, %v3070_v31   ;;  %3140 = vperm.xlu0 %3868, %v3078_v55   ;;  %v3079_v50 = vmul.f32 %v4380_v58, %v3063_v35  ;;  %v6109_v59 = vpop.permute.xlu1 %3233  ;;  %v3058_v31 = vld [vmem:[%s6274_s2 + $0x38] sm:$0xff]  ;;  %v3209_v35 = vld [vmem:[%s6273_s3 + $0x70] sm:$0xff] }
 0x312   :  { %v6113_v36 = vpop.permute.xlu0 %3228 }
 0x314   :  { %3105 = vperm.xlu1 %3867, %v3071_v22   ;;  %v6111_v49 = vpop.permute.xlu1 %3243 }
 0x315   :  { %v4382_v0 = vpop.eup %4381 }
 0x316   :  { %v3080_v57 = vmul.f32 %v4382_v0, %v3064_v40  ;;  %v4384_v37 = vpop.eup %4383  ;;  %v6121_v58 = vpop.permute.xlu0 %3238  ;;  %v3210_v0 = vld [vmem:[%s6273_s3 + $0x78] sm:$0xff] }
 0x317   :  { %v3072_v12 = vmul.f32 %v4384_v37, %v3056_v54  ;;  %v4386_v6 = vpop.eup %4385 }
 0x318   :  { %3145 = vperm.xlu1 %3867, %v3079_v50   ;;  %3150 = vperm.xlu0 %3868, %v3080_v57   ;;  %v3073_v17 = vmul.f32 %v4386_v6, %v3057_v42  ;;  %v4388_v46 = vpop.eup %4387 }
 0x319   :  { %v3081_v27 = vmul.f32 %v4388_v46, %v3065_v2 }
 0x31a   :  { %v6129_v50 = vpop.permute.xlu0 %3248 }
 0x31c   :  { %3110 = vperm.xlu1 %3867, %v3072_v12  }
 0x31e   :  { %v3259_v57 = vpop.permute.xlu0 %3258 }
 0x320   :  { %3115 = vperm.xlu1 %3867, %v3073_v17  }
 0x322   :  { %v6131_v54 = vpop.permute.xlu0 %3268 }
 0x324   :  { %3155 = vperm.xlu1 %3867, %v3081_v27  }
 0x326   :  { %v6133_v6 = vpop.permute.xlu0 %3278 }
 0x344   :  { %v2970_v20 = vpop.xlane.xlu1 %2969 }
 0x345   :  { %v3010_v3 = vmul.f32 0.0051020407, %v2970_v20 }
 0x347   :  { %v3026_v33 = vadd.f32 1e-05, %v3010_v3 }
 0x348   :  { %v3002_v63 = vpop.xlane.xlu1 %3001 }
 0x349   :  { %4389 = vrsqrt.f32 %v3026_v33  ;;  %v3018_v11 = vmul.f32 0.0051020407, %v3002_v63 }
 0x34b   :  { %v3034_v51 = vadd.f32 1e-05, %v3018_v11 }
 0x34c   :  { %v3254_v37 = vpop.permute.xlu1 %3253 }
 0x34d   :  { %4391 = vrsqrt.f32 %v3034_v51 }
 0x350   :  { %v3264_v12 = vpop.permute.xlu1 %3263 }
 0x354   :  { %v6135_v42 = vpop.permute.xlu1 %3273 }
 0x356   :  { %v4390_v55 = vpop.eup %4389 }
 0x357   :  { %v3074_v10 = vmul.f32 %v4390_v55, %v3058_v31 }
 0x359   :  { %3120 = vperm.xlu1 %3867, %v3074_v10  }
 0x35a   :  { %v4392_v22 = vpop.eup %4391 }
 0x35b   :  { %v3082_v40 = vmul.f32 %v4392_v22, %v3066_v34 }
 0x35d   :  { %3283 = vperm.xlu1 %3867, %v3209_v35   ;;  %3160 = vperm.xlu0 %3868, %v3082_v40  }
 0x361   :  { %3288 = vperm.xlu0 %3868, %v3210_v0  }
 0x376   :  { %v3086_v17 = vpop.permute.xlu0 %3085 }
 0x377   :  { %v3163_v46 = vmul.f32 %v3086_v17, %v5848_v43  ;;  %v3164_v2 = vmul.f32 %v3086_v17, %v5851_v18 }
 0x379   :  { %v3291_v27 = vadd.f32 %v3214_v23, %v3163_v46  ;;  %v3292_v20 = vadd.f32 %v3214_v23, %v3164_v2 }
 0x37a   :  { %v3126_v3 = vpop.permute.xlu1 %3125 }
 0x37b   :  { %v3323_v33 = vmax.f32 %v3291_v27, 0.0  ;;  %v3324_v63 = vmax.f32 %v3292_v20, 0.0  ;;  %v3179_v11 = vmul.f32 %v3126_v3, %v5858_v26  ;;  %v3180_v51 = vmul.f32 %v3126_v3, %v5861_v29 }
 0x37d   :  { %v3826_v55 = vpack.c.bf16 %v3324_v63, %v3323_v33  ;;  %v3307_v10 = vadd.f32 %v3254_v37, %v3179_v11  ;;  %v3308_v43 = vadd.f32 %v3254_v37, %v3180_v51 }
 0x37f   :  { %3454 = vst.msk [vmem:[%s6275_s4] sm:$0xff] %vm6141_vm4, %v3826_v55  ;;  %v3339_v18 = vmax.f32 %v3307_v10, 0.0  ;;  %v3340_v23 = vmax.f32 %v3308_v43, 0.0  ;;  %v3091_v34 = vpop.permute.xlu1 %3090 }
 0x380   :  { %v3165_v26 = vmul.f32 %v3091_v34, %v5878_v45  ;;  %v3166_v29 = vmul.f32 %v3091_v34, %v5881_v60 }
 0x381   :  { %v3834_v22 = vpack.c.bf16 %v3340_v23, %v3339_v18 }
 0x382   :  { %v3293_v35 = vadd.f32 %v3219_v38, %v3165_v26  ;;  %v3294_v40 = vadd.f32 %v3219_v38, %v3166_v29 }
 0x383   :  { %3462 = vst.msk [vmem:[%s6275_s4 + $0x40] sm:$0xff] %vm6141_vm4, %v3834_v22  ;;  %v3131_v0 = vpop.permute.xlu0 %3130  ;;  %v3096_v37 = vpop.permute.xlu1 %3095 }
 0x384   :  { %v3325_v17 = vmax.f32 %v3293_v35, 0.0  ;;  %v3326_v46 = vmax.f32 %v3294_v40, 0.0  ;;  %v3181_v2 = vmul.f32 %v3131_v0, %v5887_v39  ;;  %v3182_v27 = vmul.f32 %v3131_v0, %v5867_v16 }
 0x385   :  { %v3167_v45 = vmul.f32 %v3096_v37, %v5872_v24  ;;  %v3168_v60 = vmul.f32 %v3096_v37, %v5875_v48 }
 0x386   :  { %v3827_v20 = vpack.c.bf16 %v3326_v46, %v3325_v17  ;;  %v3309_v38 = vadd.f32 %v3259_v57, %v3181_v2  ;;  %v3310_v3 = vadd.f32 %v3259_v57, %v3182_v27 }
 0x387   :  { %v3295_v33 = vadd.f32 %v6107_v52, %v3167_v45  ;;  %v3296_v63 = vadd.f32 %v6107_v52, %v3168_v60  ;;  %v3136_v11 = vpop.permute.xlu1 %3135 }
 0x388   :  { %3455 = vst.msk [vmem:[%s6275_s4 + $0x8] sm:$0xff] %vm6141_vm4, %v3827_v20  ;;  %v3341_v39 = vmax.f32 %v3309_v38, 0.0  ;;  %v3342_v16 = vmax.f32 %v3310_v3, 0.0  ;;  %v3183_v24 = vmul.f32 %v3136_v11, %v5899_v41  ;;  %v3184_v48 = vmul.f32 %v3136_v11, %v5902_v44 }
 0x389   :  { %v3327_v51 = vmax.f32 %v3295_v33, 0.0  ;;  %v3328_v55 = vmax.f32 %v3296_v63, 0.0 }
 0x38a   :  { %v3835_v57 = vpack.c.bf16 %v3342_v16, %v3341_v39  ;;  %v3311_v10 = vadd.f32 %v3264_v12, %v3183_v24  ;;  %v3312_v43 = vadd.f32 %v3264_v12, %v3184_v48 }
 0x38b   :  { %v3828_v18 = vpack.c.bf16 %v3328_v55, %v3327_v51  ;;  %v3141_v52 = vpop.permute.xlu0 %3140  ;;  %v3101_v23 = vpop.permute.xlu1 %3100 }
 0x38c   :  { %3463 = vst.msk [vmem:[%s6275_s4 + $0x48] sm:$0xff] %vm6141_vm4, %v3835_v57  ;;  %v3343_v34 = vmax.f32 %v3311_v10, 0.0  ;;  %v3344_v26 = vmax.f32 %v3312_v43, 0.0  ;;  %v3185_v41 = vmul.f32 %v3141_v52, %v5936_v14  ;;  %v3186_v44 = vmul.f32 %v3141_v52, %v5920_v47 }
 0x38d   :  { %3456 = vst.msk [vmem:[%s6275_s4 + $0x10] sm:$0xff] %vm6141_vm4, %v3828_v18  ;;  %v3169_v12 = vmul.f32 %v3101_v23, %v5907_v8  ;;  %v3170_v29 = vmul.f32 %v3101_v23, %v5896_v13 }
 0x38e   :  { %v3836_v22 = vpack.c.bf16 %v3344_v26, %v3343_v34  ;;  %v3313_v35 = vadd.f32 %v6131_v54, %v3185_v41  ;;  %v3314_v40 = vadd.f32 %v6131_v54, %v3186_v44 }
 0x38f   :  { %v3297_v0 = vadd.f32 %v6113_v36, %v3169_v12  ;;  %v3298_v14 = vadd.f32 %v6113_v36, %v3170_v29  ;;  %v3106_v47 = vpop.permute.xlu1 %3105 }
 0x390   :  { %3464 = vst.msk [vmem:[%s6275_s4 + $0x50] sm:$0xff] %vm6141_vm4, %v3836_v22  ;;  %v3345_v37 = vmax.f32 %v3313_v35, 0.0  ;;  %v3346_v8 = vmax.f32 %v3314_v40, 0.0  ;;  %v3171_v13 = vmul.f32 %v3106_v47, %v5923_v15  ;;  %v3172_v17 = vmul.f32 %v3106_v47, %v5926_v30 }
 0x391   :  { %v3329_v46 = vmax.f32 %v3297_v0, 0.0  ;;  %v3330_v2 = vmax.f32 %v3298_v14, 0.0 }
 0x392   :  { %v3837_v54 = vpack.c.bf16 %v3346_v8, %v3345_v37  ;;  %v3299_v27 = vadd.f32 %v6109_v59, %v3171_v13  ;;  %v3300_v36 = vadd.f32 %v6109_v59, %v3172_v17 }
 0x393   :  { %v3829_v45 = vpack.c.bf16 %v3330_v2, %v3329_v46  ;;  %v3151_v60 = vpop.permute.xlu0 %3150  ;;  %v3146_v20 = vpop.permute.xlu1 %3145 }
 0x394   :  { %3465 = vst.msk [vmem:[%s6275_s4 + $0x58] sm:$0xff] %vm6141_vm4, %v3837_v54  ;;  %v3331_v38 = vmax.f32 %v3299_v27, 0.0  ;;  %v3332_v15 = vmax.f32 %v3300_v36, 0.0  ;;  %v3189_v30 = vmul.f32 %v3151_v60, %v5977_v7  ;;  %v3190_v3 = vmul.f32 %v3151_v60, %v5963_v62 }
 0x395   :  { %3457 = vst.msk [vmem:[%s6275_s4 + $0x18] sm:$0xff] %vm6141_vm4, %v3829_v45  ;;  %v3187_v59 = vmul.f32 %v3146_v20, %v5946_v4  ;;  %v3188_v33 = vmul.f32 %v3146_v20, %v5949_v25 }
 0x396   :  { %v3830_v63 = vpack.c.bf16 %v3332_v15, %v3331_v38  ;;  %v3317_v11 = vadd.f32 %v6133_v6, %v3189_v30  ;;  %v3318_v39 = vadd.f32 %v6133_v6, %v3190_v3 }
 0x397   :  { %v3315_v16 = vadd.f32 %v6135_v42, %v3187_v59  ;;  %v3316_v7 = vadd.f32 %v6135_v42, %v3188_v33  ;;  %v3111_v62 = vpop.permute.xlu1 %3110 }
 0x398   :  { %3458 = vst.msk [vmem:[%s6275_s4 + $0x20] sm:$0xff] %vm6141_vm4, %v3830_v63  ;;  %v3349_v24 = vmax.f32 %v3317_v11, 0.0  ;;  %v3350_v4 = vmax.f32 %v3318_v39, 0.0  ;;  %v3173_v25 = vmul.f32 %v3111_v62, %v5955_v19  ;;  %v3174_v48 = vmul.f32 %v3111_v62, %v5943_v1 }
 0x399   :  { %v3347_v51 = vmax.f32 %v3315_v16, 0.0  ;;  %v3348_v55 = vmax.f32 %v3316_v7, 0.0 }
 0x39a   :  { %v3839_v6 = vpack.c.bf16 %v3350_v4, %v3349_v24  ;;  %v3301_v57 = vadd.f32 %v6121_v58, %v3173_v25  ;;  %v3302_v42 = vadd.f32 %v6121_v58, %v3174_v48 }
 0x39b   :  { %v3838_v10 = vpack.c.bf16 %v3348_v55, %v3347_v51  ;;  %v3116_v43 = vpop.permute.xlu1 %3115 }
 0x39c   :  { %3467 = vst.msk [vmem:[%s6275_s4 + $0x68] sm:$0xff] %vm6141_vm4, %v3839_v6  ;;  %v3333_v18 = vmax.f32 %v3301_v57, 0.0  ;;  %v3334_v52 = vmax.f32 %v3302_v42, 0.0  ;;  %v3175_v19 = vmul.f32 %v3116_v43, %v5966_v56  ;;  %v3176_v1 = vmul.f32 %v3116_v43, %v5969_v32 }
 0x39d   :  { %3466 = vst.msk [vmem:[%s6275_s4 + $0x60] sm:$0xff] %vm6141_vm4, %v3838_v10 }
 0x39e   :  { %v3831_v58 = vpack.c.bf16 %v3334_v52, %v3333_v18  ;;  %v3303_v23 = vadd.f32 %v6111_v49, %v3175_v19  ;;  %v3304_v34 = vadd.f32 %v6111_v49, %v3176_v1 }
 0x39f   :  { %v3156_v41 = vpop.permute.xlu1 %3155 }
 0x3a0   :  { %3459 = vst.msk [vmem:[%s6275_s4 + $0x28] sm:$0xff] %vm6141_vm4, %v3831_v58  ;;  %v3335_v56 = vmax.f32 %v3303_v23, 0.0  ;;  %v3336_v26 = vmax.f32 %v3304_v34, 0.0  ;;  %v3191_v35 = vmul.f32 %v3156_v41, %v5984_v5  ;;  %v3192_v40 = vmul.f32 %v3156_v41, %v5987_v9 }
 0x3a2   :  { %v3832_v32 = vpack.c.bf16 %v3336_v26, %v3335_v56 }
 0x3a4   :  { %3460 = vst.msk [vmem:[%s6275_s4 + $0x30] sm:$0xff] %vm6141_vm4, %v3832_v32 }
 0x3d4   :  { %v3121_v44 = vpop.permute.xlu1 %3120 }
 0x3d5   :  { %v3177_v12 = vmul.f32 %v3121_v44, %v6038_v21  ;;  %v3178_v49 = vmul.f32 %v3121_v44, %v6035_v61 }
 0x3d7   :  { %v3305_v29 = vadd.f32 %v6129_v50, %v3177_v12  ;;  %v3306_v22 = vadd.f32 %v6129_v50, %v3178_v49 }
 0x3d8   :  { %v3161_v0 = vpop.permute.xlu0 %3160  ;;  %v3284_v14 = vpop.permute.xlu1 %3283 }
 0x3d9   :  { %v3337_v47 = vmax.f32 %v3305_v29, 0.0  ;;  %v3338_v37 = vmax.f32 %v3306_v22, 0.0  ;;  %v3319_v8 = vadd.f32 %v3284_v14, %v3191_v35  ;;  %v3320_v13 = vadd.f32 %v3284_v14, %v3192_v40 }
 0x3da   :  { %v3193_v46 = vmul.f32 %v3161_v0, %v6046_v53  ;;  %v3194_v21 = vmul.f32 %v3161_v0, %v6041_v28 }
 0x3db   :  { %v3833_v17 = vpack.c.bf16 %v3338_v37, %v3337_v47  ;;  %v3351_v61 = vmax.f32 %v3319_v8, 0.0  ;;  %v3352_v2 = vmax.f32 %v3320_v13, 0.0 }
 0x3dc   :  { %v3289_v54 = vpop.permute.xlu0 %3288 }
 0x3dd   :  { %3461 = vst.msk [vmem:[%s6275_s4 + $0x38] sm:$0xff] %vm6141_vm4, %v3833_v17  ;;  %v3321_v5 = vadd.f32 %v3289_v54, %v3193_v46  ;;  %v3322_v9 = vadd.f32 %v3289_v54, %v3194_v21  ;;  %v3840_v50 = vpack.c.bf16 %v3352_v2, %v3351_v61 }
 0x3df   :  { %v3353_v27 = vmax.f32 %v3321_v5, 0.0  ;;  %v3354_v36 = vmax.f32 %v3322_v9, 0.0  ;;  %3468 = vst.msk [vmem:[%s6275_s4 + $0x70] sm:$0xff] %vm6141_vm4, %v3840_v50 }
 0x3e1   :  { %v3841_v28 = vpack.c.bf16 %v3354_v36, %v3353_v27 }
 0x3e3   :  { %3469 = vst.msk [vmem:[%s6275_s4 + $0x78] sm:$0xff] %vm6141_vm4, %v3841_v28 }

</bundles_post_ra>
